<compile_context>
chip_gen: v6e
topology: v6e:2x2x1
jax: 0.10.0
libtpu: 0.0.40
codegen_flags: <defaults>
</compile_context>

<pallas_src>
import functools

import numpy as np
import jax
import jax.numpy as jnp
from jax import lax
from jax.experimental import pallas as pl
from jax.experimental.pallas import tpu as pltpu

# ---------------- surrogate-encoder dimensions ----------------
VOCAB = 128          # == MXU contraction width -> word one-hot matmul is one pass
SEQ = 8
HID = 32
FFN = 64
BATCH = 4
LN_EPS = 1e-12

OUT_LANES = 128
SLAB_LANES = 128

# ---------------- packed weight-slab layout (f32, 128 lanes) ----------------
R_WQKV = 0                 # (HID, 3*HID) lanes 0:96   fused Wq|Wk|Wv
R_WO = R_WQKV + HID        # 32  (HID, HID)
R_WP = R_WO + HID          # 64  (HID, HID)  pooler
R_W1 = R_WP + HID          # 96  (HID, FFN)  lanes 0:64
R_W2 = R_W1 + HID          # 128 (FFN, HID)
R_POS = R_W2 + FFN         # 192 (SEQ, HID)  positional embedding table
R_TYPE = R_POS + SEQ       # 200 (2, HID)    token-type embedding table
R_BQKV = R_TYPE + 2        # 202 (1, 3*HID)  fused bq|bk|bv
R_BO = R_BQKV + 1          # 203
R_BP = R_BO + 1            # 204
R_B1 = R_BP + 1            # 205 lanes 0:64
R_B2 = R_B1 + 1            # 206
R_LN1G = R_B2 + 1          # 207
R_LN1B = R_LN1G + 1        # 208
R_LN2G = R_LN1B + 1        # 209
R_LN2B = R_LN2G + 1        # 210
SLAB_ROWS = ((R_LN2B + 1 + 7) // 8) * 8   # 216


# ---------------------------------------------------------------------------
# Single fused kernel: embeddings + encoder + pooler + ranking head.
# ---------------------------------------------------------------------------
def _make_pipeline_kernel(neg_type, batch, seq, out_rows):
    tot = 3 * batch * seq
    scale = 1.0 / (float(HID) ** 0.5)
    bf16 = jnp.bfloat16

    def _layer_norm(x, g, b):
        mu = jnp.mean(x, axis=-1, keepdims=True)
        var = jnp.mean((x - mu) ** 2, axis=-1, keepdims=True)
        return (x - mu) * lax.rsqrt(var + LN_EPS) * g + b

    def kernel(ids_ref, tts_ref, mask_ref, blk_ref, wemb_ref, slab_ref, out_ref):
        # ---- embedding lookup fused in-kernel (one-hot matmuls, bf16 MXU) ----
        ids = ids_ref[...]                                         # (tot, 1) i32
        lane = lax.broadcasted_iota(jnp.int32, (tot, VOCAB), 1)
        word_oh = (lane == ids).astype(bf16)                        # (tot, VOCAB)
        x = jnp.dot(word_oh, wemb_ref[...].astype(bf16),
                    preferred_element_type=jnp.float32)             # (tot, HID)

        tok = lax.broadcasted_iota(jnp.int32, (tot, seq), 0)
        posl = lax.broadcasted_iota(jnp.int32, (tot, seq), 1)
        pos_oh = ((tok % seq) == posl).astype(bf16)                  # (tot, seq)
        pemb = slab_ref[R_POS:R_POS + seq, 0:HID].astype(bf16)
        x = x + jnp.dot(pos_oh, pemb, preferred_element_type=jnp.float32)

        tts = tts_ref[...]                                          # (tot, 1) i32
        te0 = slab_ref[R_TYPE:R_TYPE + 1, 0:HID]
        te1 = slab_ref[R_TYPE + 1:R_TYPE + 2, 0:HID]
        x = x + jnp.where(tts > 0, te1, te0)                         # (tot, HID)

        # ---- fused QKV projection: ONE bf16 MXU pass with N = 3*HID ----
        xb = x.astype(bf16)
        wqkv = slab_ref[R_WQKV:R_WQKV + HID, 0:3 * HID].astype(bf16)
        bqkv = slab_ref[R_BQKV:R_BQKV + 1, 0:3 * HID]
        qkv = jnp.dot(xb, wqkv, preferred_element_type=jnp.float32) + bqkv
        q = qkv[:, 0:HID]
        k = qkv[:, HID:2 * HID]
        v = qkv[:, 2 * HID:3 * HID]

        # ---- scores: contract hidden on BOTH operands (no K transpose) ----
        qb = (q * scale).astype(bf16)
        kb = k.astype(bf16)
        scores = lax.dot_general(qb, kb, (((1,), (1,)), ((), ())),
                                 preferred_element_type=jnp.float32)  # (tot, tot)
        key_bias = (mask_ref[...] - 1.0) * 1e9                        # 0 keep / -1e9 pad
        scores = scores + blk_ref[...] + key_bias                     # + static block-diag bias

        m = jnp.max(scores, axis=-1, keepdims=True)
        e = jnp.exp(scores - m)
        attn = e * pl.reciprocal(jnp.sum(e, axis=-1, keepdims=True), approx=True)

        ctx = jnp.dot(attn.astype(bf16), v.astype(bf16),
                      preferred_element_type=jnp.float32)             # (tot, HID)
        wo = slab_ref[R_WO:R_WO + HID, 0:HID].astype(bf16)
        bo = slab_ref[R_BO:R_BO + 1, 0:HID]
        attn_out = jnp.dot(ctx.astype(bf16), wo,
                           preferred_element_type=jnp.float32) + bo
        g1 = slab_ref[R_LN1G:R_LN1G + 1, 0:HID]
        be1 = slab_ref[R_LN1B:R_LN1B + 1, 0:HID]
        h = _layer_norm(x + attn_out, g1, be1)

        # ---- FFN ----
        w1 = slab_ref[R_W1:R_W1 + HID, 0:FFN].astype(bf16)
        b1 = slab_ref[R_B1:R_B1 + 1, 0:FFN]
        ff = jnp.dot(h.astype(bf16), w1, preferred_element_type=jnp.float32) + b1
        ff = jax.nn.gelu(ff, approximate=True)
        w2 = slab_ref[R_W2:R_W2 + FFN, 0:HID].astype(bf16)
        b2 = slab_ref[R_B2:R_B2 + 1, 0:HID]
        ff = jnp.dot(ff.astype(bf16), w2, preferred_element_type=jnp.float32) + b2
        g2 = slab_ref[R_LN2G:R_LN2G + 1, 0:HID]
        be2 = slab_ref[R_LN2B:R_LN2B + 1, 0:HID]
        h2 = _layer_norm(h + ff, g2, be2)

        # ---- [CLS] pooler: ONE selection matmul + ONE pooler matmul + ONE tanh
        gi = lax.broadcasted_iota(jnp.int32, (3 * batch, tot), 0)
        gj = lax.broadcasted_iota(jnp.int32, (3 * batch, tot), 1)
        sel = (gj == gi * seq).astype(bf16)                           # (3B, tot)
        cls = jnp.dot(sel, h2.astype(bf16), preferred_element_type=jnp.float32)
        wp = slab_ref[R_WP:R_WP + HID, 0:HID].astype(bf16)
        bp = slab_ref[R_BP:R_BP + 1, 0:HID]
        pooled = jnp.tanh(jnp.dot(cls.astype(bf16), wp,
                                  preferred_element_type=jnp.float32) + bp)
        qr = pooled[0:batch, :]                 # (B, HID) query reps
        pr = pooled[batch:2 * batch, :]         # (B, HID) positive reps
        nr = pooled[2 * batch:3 * batch, :]     # (B, HID) negative reps

        # ---- ranking head: blockwise LSE / argmax (no lane concatenation) ----
        pos_dot = jnp.sum(qr * pr, axis=-1, keepdims=True)            # (B, 1)
        contr = (((1,), (1,)), ((), ()))

        if neg_type == "neg":
            piece_a, off_a = pos_dot, 0
            piece_b, off_b = jnp.sum(qr * nr, axis=-1, keepdims=True), 1
        elif neg_type == "all_neg":
            piece_a, off_a = pos_dot, 0
            piece_b, off_b = lax.dot_general(
                qr, nr, contr, preferred_element_type=jnp.float32), 1
        elif neg_type == "other_pos+neg":
            piece_a, off_a = lax.dot_general(
                qr, pr, contr, preferred_element_type=jnp.float32), 0
            piece_b, off_b = jnp.sum(qr * nr, axis=-1, keepdims=True), batch
        elif neg_type == "other_pos+all_neg":
            piece_a, off_a = lax.dot_general(
                qr, pr, contr, preferred_element_type=jnp.float32), 0
            piece_b, off_b = lax.dot_general(
                qr, nr, contr, preferred_element_type=jnp.float32), batch
        else:
            raise ValueError(neg_type)

        # In every branch the correct-class logit equals <q_i, p_i> = pos_dot.
        mx = jnp.maximum(jnp.max(piece_a, axis=-1, keepdims=True),
                         jnp.max(piece_b, axis=-1, keepdims=True))
        sum_exp = (jnp.sum(jnp.exp(piece_a - mx), axis=-1, keepdims=True)
                   + jnp.sum(jnp.exp(piece_b - mx), axis=-1, keepdims=True))
        lse = mx + jnp.log(sum_exp)
        ce = lse - pos_dot                                            # (B, 1)
        loss = jnp.sum(ce, axis=0, keepdims=True) * (1.0 / batch)     # (1, 1)

        # argmax with first-occurrence tie-break (Python literals only; earlier
        # pieces carry smaller column offsets, so min-index is correct).
        col_a = lax.broadcasted_iota(jnp.int32, piece_a.shape, 1) + off_a
        col_b = lax.broadcasted_iota(jnp.int32, piece_b.shape, 1) + off_b
        idx_a = jnp.min(jnp.where(piece_a >= mx, col_a, 2 ** 30),
                        axis=-1, keepdims=True)
        idx_b = jnp.min(jnp.where(piece_b >= mx, col_b, 2 ** 30),
                        axis=-1, keepdims=True)
        preds = jnp.minimum(idx_a, idx_b)                             # (B, 1) i32

        # ---- single lane-dense (out_rows, 128) f32 output slab ----
        out_ref[0:1, :] = jnp.broadcast_to(loss, (1, OUT_LANES))
        out_ref[1:1 + batch, :] = jnp.broadcast_to(
            preds.astype(jnp.float32), (batch, OUT_LANES))
        if 1 + batch < out_rows:
            out_ref[1 + batch:out_rows, :] = jnp.broadcast_to(
                loss * 0.0, (out_rows - 1 - batch, OUT_LANES))

    return kernel


# ---------------------------------------------------------------------------
# Wrapper: tiny int32 stacking only; everything else lives in the kernel.
# ---------------------------------------------------------------------------
def _forward(params,
             query_input_ids, query_token_type_ids, query_attention_mask,
             pos_input_ids, pos_token_type_ids, pos_attention_mask,
             neg_input_ids, neg_token_type_ids, neg_attention_mask,
             *, neg_type):
    B, S = query_input_ids.shape
    tot = 3 * B * S
    out_rows = ((1 + B + 7) // 8) * 8

    ids = jnp.concatenate([query_input_ids, pos_input_ids, neg_input_ids],
                          axis=0).reshape(tot, 1).astype(jnp.int32)
    tts = jnp.concatenate([query_token_type_ids, pos_token_type_ids,
                           neg_token_type_ids],
                          axis=0).reshape(tot, 1).astype(jnp.int32)
    msk = jnp.concatenate([query_attention_mask, pos_attention_mask,
                           neg_attention_mask],
                          axis=0).reshape(1, tot).astype(jnp.float32)

    # Static block-diagonal (same-example) additive mask, built with numpy at
    # trace time -> compile-time constant input (no per-call compute, no
    # in-kernel (tot,tot) iota / divide / compare temporaries).
    blk_np = np.kron(np.eye(3 * B, dtype=np.float32), np.ones((S, S), np.float32))
    blk = jnp.asarray((blk_np - 1.0) * 1e9)

    vmem = pltpu.MemorySpace.VMEM
    out = pl.pallas_call(
        _make_pipeline_kernel(neg_type, B, S, out_rows),
        out_shape=jax.ShapeDtypeStruct((out_rows, OUT_LANES), jnp.float32),
        in_specs=[pl.BlockSpec(memory_space=vmem)] * 6,
        out_specs=pl.BlockSpec(memory_space=vmem),
    )(ids, tts, msk, blk, params["word_emb"], params["slab"])

    loss = out[0, 0]
    preds = out[1:1 + B, 0].astype(jnp.int32)
    # labels depend only on neg_type -> compile-time constants (no kernel work)
    if neg_type in ("neg", "all_neg"):
        labels = jnp.zeros((B,), jnp.int32)
    else:
        labels = jnp.arange(B, dtype=jnp.int32)
    return loss, preds, labels


# ---------------------------------------------------------------------------
# Parameter init (deterministic, in-script) + slab packing
# ---------------------------------------------------------------------------
def init_params(key):
    ks = jax.random.split(key, 10)
    s = 0.02

    def nrm(k, shape):
        return (s * jax.random.normal(k, shape)).astype(jnp.float32)

    word_emb = nrm(ks[0], (VOCAB, HID))
    pos_emb = nrm(ks[1], (SEQ, HID))
    type_emb = nrm(ks[2], (2, HID))
    wq = nrm(ks[3], (HID, HID))
    wk = nrm(ks[4], (HID, HID))
    wv = nrm(ks[5], (HID, HID))
    wo = nrm(ks[6], (HID, HID))
    w1 = nrm(ks[7], (HID, FFN))
    w2 = nrm(ks[8], (FFN, HID))
    wp = nrm(ks[9], (HID, HID))

    slab = jnp.zeros((SLAB_ROWS, SLAB_LANES), jnp.float32)
    slab = slab.at[R_WQKV:R_WQKV + HID, 0:3 * HID].set(
        jnp.concatenate([wq, wk, wv], axis=1))
    slab = slab.at[R_WO:R_WO + HID, 0:HID].set(wo)
    slab = slab.at[R_WP:R_WP + HID, 0:HID].set(wp)
    slab = slab.at[R_W1:R_W1 + HID, 0:FFN].set(w1)
    slab = slab.at[R_W2:R_W2 + FFN, 0:HID].set(w2)
    slab = slab.at[R_POS:R_POS + SEQ, 0:HID].set(pos_emb)
    slab = slab.at[R_TYPE:R_TYPE + 2, 0:HID].set(type_emb)
    # biases / LN betas stay zero; LN gammas = 1
    slab = slab.at[R_LN1G, 0:HID].set(1.0)
    slab = slab.at[R_LN2G, 0:HID].set(1.0)

    return {"word_emb": word_emb, "slab": slab}


# ---------------------------------------------------------------------------
# RankerTrainingPipeline (E_T path)
# ---------------------------------------------------------------------------
class RankerTrainingPipeline:
    def __init__(self, neg_type, model_type="E_T", key=None):
        if model_type != "E_T":
            # TODO(synk): E_MM / DEDR_joint need the pretrained LXMERT
            # cross-modal encoder; only the text-encoder (E_T) path is ported.
            raise NotImplementedError(model_type)
        self.neg_type = neg_type
        self.model_type = model_type
        self.params = init_params(
            key if key is not None else jax.random.PRNGKey(0))
        self._fwd = jax.jit(functools.partial(_forward, neg_type=neg_type))

    def __call__(self,
                 query_input_ids_bert, query_token_type_ids_bert,
                 query_attention_mask_bert,
                 pos_input_ids_bert, pos_token_type_ids_bert,
                 pos_attention_mask_bert,
                 neg_input_ids_bert, neg_token_type_ids_bert,
                 neg_attention_mask_bert):
        return self._fwd(self.params,
                         query_input_ids_bert, query_token_type_ids_bert,
                         query_attention_mask_bert,
                         pos_input_ids_bert, pos_token_type_ids_bert,
                         pos_attention_mask_bert,
                         neg_input_ids_bert, neg_token_type_ids_bert,
                         neg_attention_mask_bert)


if __name__ == "__main__":
    key = jax.random.PRNGKey(0)
    kq, kp, kn, kparams = jax.random.split(key, 4)

    def make_inputs(k):
        ids = jax.random.randint(k, (BATCH, SEQ), 0, VOCAB, dtype=jnp.int32)
        tt = jnp.zeros((BATCH, SEQ), jnp.int32)
        mask = jnp.ones((BATCH, SEQ), jnp.int32).at[:, SEQ - 2:].set(0)
        return ids, tt, mask

    qi, qt, qm = make_inputs(kq)
    pi, pt, pm = make_inputs(kp)
    ni, nt, nm = make_inputs(kn)

    for neg_type in ("neg", "all_neg", "other_pos+neg", "other_pos+all_neg"):
        pipe = RankerTrainingPipeline(neg_type=neg_type, model_type="E_T",
                                      key=kparams)
        loss, preds, labels = pipe(qi, qt, qm, pi, pt, pm, ni, nt, nm)
        jax.block_until_ready((loss, preds, labels))

    print("KERNEL_OK")
</pallas_src>

<mosaic_0001>
module attributes {stable_mosaic.version = 11 : i64} {
  func.func @kernel(%arg0: memref<96x1xi32, #tpu.memory_space<vmem>>, %arg1: memref<96x1xi32, #tpu.memory_space<vmem>>, %arg2: memref<1x96xf32, #tpu.memory_space<vmem>>, %arg3: memref<96x96xf32, #tpu.memory_space<vmem>>, %arg4: memref<128x32xf32, #tpu.memory_space<vmem>>, %arg5: memref<216x128xf32, #tpu.memory_space<vmem>>, %arg6: memref<8x128xf32, #tpu.memory_space<vmem>>) attributes {dimension_semantics = [], scalar_prefetch = 0 : i64, scratch_operands = 0 : i64, tpu.core_type = #tpu.core_type<tc>} {
    %c0 = arith.constant 0 : index
    %c0_0 = arith.constant 0 : index
    %0 = vector.load %arg0[%c0, %c0_0] : memref<96x1xi32, #tpu.memory_space<vmem>>, vector<96x1xi32>
    %1 = tpu.iota {dimensions = array<i32: 1>} : vector<96x128xi32>
    %2 = vector.broadcast %0 : vector<96x1xi32> to vector<96x128xi32>
    %3 = arith.cmpi eq, %1, %2 : vector<96x128xi32>
    %4 = arith.extui %3 : vector<96x128xi1> to vector<96x128xi32>
    %5 = arith.sitofp %4 : vector<96x128xi32> to vector<96x128xf32>
    %6 = arith.truncf %5 : vector<96x128xf32> to vector<96x128xbf16>
    %c0_1 = arith.constant 0 : index
    %c0_2 = arith.constant 0 : index
    %7 = vector.load %arg4[%c0_1, %c0_2] : memref<128x32xf32, #tpu.memory_space<vmem>>, vector<128x32xf32>
    %8 = arith.truncf %7 : vector<128x32xf32> to vector<128x32xbf16>
    %cst = arith.constant dense<0.000000e+00> : vector<96x32xf32>
    %9 = tpu.matmul %6, %8, %cst {dimension_numbers = #tpu.dot_dimension_numbers<[1], [0], [0], [1], [0, 0, 1, 1], [], []>} : vector<96x128xbf16>, vector<128x32xbf16>, vector<96x32xf32> -> vector<96x32xf32>
    %10 = tpu.iota {dimensions = array<i32: 0>} : vector<96x8xi32>
    %11 = tpu.iota {dimensions = array<i32: 1>} : vector<96x8xi32>
    %c8_i32 = arith.constant 8 : i32
    %c0_i32 = arith.constant 0 : i32
    %12 = arith.cmpi eq, %c8_i32, %c0_i32 : i32
    %c1_i32 = arith.constant 1 : i32
    %13 = arith.select %12, %c1_i32, %c8_i32 : i32
    %14 = vector.broadcast %13 : i32 to vector<96x8xi32>
    %15 = arith.remsi %10, %14 : vector<96x8xi32>
    %c0_i32_3 = arith.constant 0 : i32
    %16 = vector.broadcast %c0_i32_3 : i32 to vector<96x8xi32>
    %17 = arith.cmpi ne, %15, %16 : vector<96x8xi32>
    %c0_i32_4 = arith.constant 0 : i32
    %18 = vector.broadcast %c0_i32_4 : i32 to vector<96x8xi32>
    %19 = arith.cmpi slt, %15, %18 : vector<96x8xi32>
    %c0_i32_5 = arith.constant 0 : i32
    %20 = arith.cmpi slt, %13, %c0_i32_5 : i32
    %21 = vector.broadcast %20 : i1 to vector<96x8xi1>
    %22 = vector.broadcast %21 : vector<96x8xi1> to vector<96x8xi1>
    %23 = arith.xori %19, %22 : vector<96x8xi1>
    %24 = arith.andi %23, %17 : vector<96x8xi1>
    %25 = vector.broadcast %13 : i32 to vector<96x8xi32>
    %26 = arith.addi %15, %25 : vector<96x8xi32>
    %27 = arith.select %24, %26, %15 : vector<96x8xi1>, vector<96x8xi32>
    %28 = arith.cmpi eq, %27, %11 : vector<96x8xi32>
    %29 = arith.extui %28 : vector<96x8xi1> to vector<96x8xi32>
    %30 = arith.sitofp %29 : vector<96x8xi32> to vector<96x8xf32>
    %31 = arith.truncf %30 : vector<96x8xf32> to vector<96x8xbf16>
    %c192 = arith.constant 192 : index
    %c0_6 = arith.constant 0 : index
    %32 = vector.load %arg5[%c192, %c0_6] : memref<216x128xf32, #tpu.memory_space<vmem>>, vector<8x32xf32>
    %33 = arith.truncf %32 : vector<8x32xf32> to vector<8x32xbf16>
    %cst_7 = arith.constant dense<0.000000e+00> : vector<96x32xf32>
    %34 = tpu.matmul %31, %33, %cst_7 {dimension_numbers = #tpu.dot_dimension_numbers<[1], [0], [0], [1], [0, 0, 1, 1], [], []>} : vector<96x8xbf16>, vector<8x32xbf16>, vector<96x32xf32> -> vector<96x32xf32>
    %35 = arith.addf %9, %34 : vector<96x32xf32>
    %c0_8 = arith.constant 0 : index
    %c0_9 = arith.constant 0 : index
    %36 = vector.load %arg1[%c0_8, %c0_9] : memref<96x1xi32, #tpu.memory_space<vmem>>, vector<96x1xi32>
    %c200 = arith.constant 200 : index
    %c0_10 = arith.constant 0 : index
    %37 = vector.load %arg5[%c200, %c0_10] : memref<216x128xf32, #tpu.memory_space<vmem>>, vector<1x32xf32>
    %c201 = arith.constant 201 : index
    %c0_11 = arith.constant 0 : index
    %38 = vector.load %arg5[%c201, %c0_11] : memref<216x128xf32, #tpu.memory_space<vmem>>, vector<1x32xf32>
    %c0_i32_12 = arith.constant 0 : i32
    %39 = vector.broadcast %c0_i32_12 : i32 to vector<96x1xi32>
    %40 = arith.cmpi sgt, %36, %39 : vector<96x1xi32>
    %41 = vector.shape_cast %40 : vector<96x1xi1> to vector<96x1xi1>
    %42 = vector.broadcast %41 : vector<96x1xi1> to vector<96x32xi1>
    %43 = vector.shape_cast %38 : vector<1x32xf32> to vector<1x32xf32>
    %44 = vector.broadcast %43 : vector<1x32xf32> to vector<96x32xf32>
    %45 = vector.shape_cast %37 : vector<1x32xf32> to vector<1x32xf32>
    %46 = vector.broadcast %45 : vector<1x32xf32> to vector<96x32xf32>
    %47 = arith.select %42, %44, %46 : vector<96x32xi1>, vector<96x32xf32>
    %48 = arith.addf %35, %47 : vector<96x32xf32>
    %49 = arith.truncf %48 : vector<96x32xf32> to vector<96x32xbf16>
    %c0_13 = arith.constant 0 : index
    %c0_14 = arith.constant 0 : index
    %50 = vector.load %arg5[%c0_13, %c0_14] : memref<216x128xf32, #tpu.memory_space<vmem>>, vector<32x96xf32>
    %51 = arith.truncf %50 : vector<32x96xf32> to vector<32x96xbf16>
    %c202 = arith.constant 202 : index
    %c0_15 = arith.constant 0 : index
    %52 = vector.load %arg5[%c202, %c0_15] : memref<216x128xf32, #tpu.memory_space<vmem>>, vector<1x96xf32>
    %cst_16 = arith.constant dense<0.000000e+00> : vector<96x96xf32>
    %53 = tpu.matmul %49, %51, %cst_16 {dimension_numbers = #tpu.dot_dimension_numbers<[1], [0], [0], [1], [0, 0, 1, 1], [], []>} : vector<96x32xbf16>, vector<32x96xbf16>, vector<96x96xf32> -> vector<96x96xf32>
    %54 = vector.broadcast %52 : vector<1x96xf32> to vector<96x96xf32>
    %55 = arith.addf %53, %54 : vector<96x96xf32>
    %56 = vector.extract_strided_slice %55 {offsets = [0, 0], sizes = [96, 32], strides = [1, 1]} : vector<96x96xf32> to vector<96x32xf32>
    %57 = vector.extract_strided_slice %55 {offsets = [0, 32], sizes = [96, 32], strides = [1, 1]} : vector<96x96xf32> to vector<96x32xf32>
    %58 = vector.extract_strided_slice %55 {offsets = [0, 64], sizes = [96, 32], strides = [1, 1]} : vector<96x96xf32> to vector<96x32xf32>
    %cst_17 = arith.constant 0.176776692 : f32
    %59 = vector.broadcast %cst_17 : f32 to vector<96x32xf32>
    %60 = arith.mulf %56, %59 : vector<96x32xf32>
    %61 = arith.truncf %60 : vector<96x32xf32> to vector<96x32xbf16>
    %62 = arith.truncf %57 : vector<96x32xf32> to vector<96x32xbf16>
    %cst_18 = arith.constant dense<0.000000e+00> : vector<96x96xf32>
    %63 = tpu.matmul %61, %62, %cst_18 {dimension_numbers = #tpu.dot_dimension_numbers<[1], [1], [0], [0], [0, 0, 1, 0], [], []>} : vector<96x32xbf16>, vector<96x32xbf16>, vector<96x96xf32> -> vector<96x96xf32>
    %c0_19 = arith.constant 0 : index
    %c0_20 = arith.constant 0 : index
    %64 = vector.load %arg2[%c0_19, %c0_20] : memref<1x96xf32, #tpu.memory_space<vmem>>, vector<1x96xf32>
    %cst_21 = arith.constant 1.000000e+00 : f32
    %65 = vector.broadcast %cst_21 : f32 to vector<1x96xf32>
    %66 = arith.subf %64, %65 : vector<1x96xf32>
    %cst_22 = arith.constant 1.000000e+09 : f32
    %67 = vector.broadcast %cst_22 : f32 to vector<1x96xf32>
    %68 = arith.mulf %66, %67 : vector<1x96xf32>
    %c0_23 = arith.constant 0 : index
    %c0_24 = arith.constant 0 : index
    %69 = vector.load %arg3[%c0_23, %c0_24] : memref<96x96xf32, #tpu.memory_space<vmem>>, vector<96x96xf32>
    %70 = arith.addf %63, %69 : vector<96x96xf32>
    %71 = vector.broadcast %68 : vector<1x96xf32> to vector<96x96xf32>
    %72 = arith.addf %70, %71 : vector<96x96xf32>
    %cst_25 = arith.constant dense<0xFF800000> : vector<96xf32>
    %73 = vector.multi_reduction <maximumf>, %72, %cst_25 [1] : vector<96x96xf32> to vector<96xf32>
    %74 = vector.shape_cast %73 : vector<96xf32> to vector<96x1xf32>
    %75 = vector.broadcast %74 : vector<96x1xf32> to vector<96x96xf32>
    %76 = arith.subf %72, %75 : vector<96x96xf32>
    %77 = math.exp %76 : vector<96x96xf32>
    %cst_26 = arith.constant dense<0.000000e+00> : vector<96xf32>
    %78 = vector.multi_reduction <add>, %77, %cst_26 [1] : vector<96x96xf32> to vector<96xf32>
    %79 = vector.shape_cast %78 : vector<96xf32> to vector<96x1xf32>
    %80 = tpu.reciprocal %79 {approx = true} : vector<96x1xf32> -> vector<96x1xf32>
    %81 = vector.broadcast %80 : vector<96x1xf32> to vector<96x96xf32>
    %82 = arith.mulf %77, %81 : vector<96x96xf32>
    %83 = arith.truncf %82 : vector<96x96xf32> to vector<96x96xbf16>
    %84 = arith.truncf %58 : vector<96x32xf32> to vector<96x32xbf16>
    %cst_27 = arith.constant dense<0.000000e+00> : vector<96x32xf32>
    %85 = tpu.matmul %83, %84, %cst_27 {dimension_numbers = #tpu.dot_dimension_numbers<[1], [0], [0], [1], [0, 0, 1, 1], [], []>} : vector<96x96xbf16>, vector<96x32xbf16>, vector<96x32xf32> -> vector<96x32xf32>
    %c32 = arith.constant 32 : index
    %c0_28 = arith.constant 0 : index
    %86 = vector.load %arg5[%c32, %c0_28] : memref<216x128xf32, #tpu.memory_space<vmem>>, vector<32x32xf32>
    %87 = arith.truncf %86 : vector<32x32xf32> to vector<32x32xbf16>
    %c203 = arith.constant 203 : index
    %c0_29 = arith.constant 0 : index
    %88 = vector.load %arg5[%c203, %c0_29] : memref<216x128xf32, #tpu.memory_space<vmem>>, vector<1x32xf32>
    %89 = arith.truncf %85 : vector<96x32xf32> to vector<96x32xbf16>
    %cst_30 = arith.constant dense<0.000000e+00> : vector<96x32xf32>
    %90 = tpu.matmul %89, %87, %cst_30 {dimension_numbers = #tpu.dot_dimension_numbers<[1], [0], [0], [1], [0, 0, 1, 1], [], []>} : vector<96x32xbf16>, vector<32x32xbf16>, vector<96x32xf32> -> vector<96x32xf32>
    %91 = vector.broadcast %88 : vector<1x32xf32> to vector<96x32xf32>
    %92 = arith.addf %90, %91 : vector<96x32xf32>
    %c207 = arith.constant 207 : index
    %c0_31 = arith.constant 0 : index
    %93 = vector.load %arg5[%c207, %c0_31] : memref<216x128xf32, #tpu.memory_space<vmem>>, vector<1x32xf32>
    %c208 = arith.constant 208 : index
    %c0_32 = arith.constant 0 : index
    %94 = vector.load %arg5[%c208, %c0_32] : memref<216x128xf32, #tpu.memory_space<vmem>>, vector<1x32xf32>
    %95 = arith.addf %48, %92 : vector<96x32xf32>
    %cst_33 = arith.constant dense<0.000000e+00> : vector<96xf32>
    %96 = vector.multi_reduction <add>, %95, %cst_33 [1] : vector<96x32xf32> to vector<96xf32>
    %97 = vector.shape_cast %96 : vector<96xf32> to vector<96x1xf32>
    %cst_34 = arith.constant 3.200000e+01 : f32
    %98 = vector.broadcast %cst_34 : f32 to vector<96x1xf32>
    %99 = arith.divf %97, %98 : vector<96x1xf32>
    %100 = vector.broadcast %99 : vector<96x1xf32> to vector<96x32xf32>
    %101 = arith.subf %95, %100 : vector<96x32xf32>
    %102 = arith.mulf %101, %101 : vector<96x32xf32>
    %cst_35 = arith.constant dense<0.000000e+00> : vector<96xf32>
    %103 = vector.multi_reduction <add>, %102, %cst_35 [1] : vector<96x32xf32> to vector<96xf32>
    %104 = vector.shape_cast %103 : vector<96xf32> to vector<96x1xf32>
    %cst_36 = arith.constant 3.200000e+01 : f32
    %105 = vector.broadcast %cst_36 : f32 to vector<96x1xf32>
    %106 = arith.divf %104, %105 : vector<96x1xf32>
    %107 = vector.broadcast %99 : vector<96x1xf32> to vector<96x32xf32>
    %108 = arith.subf %95, %107 : vector<96x32xf32>
    %cst_37 = arith.constant 9.99999996E-13 : f32
    %109 = vector.broadcast %cst_37 : f32 to vector<96x1xf32>
    %110 = arith.addf %106, %109 : vector<96x1xf32>
    %111 = math.rsqrt %110 : vector<96x1xf32>
    %112 = vector.broadcast %111 : vector<96x1xf32> to vector<96x32xf32>
    %113 = arith.mulf %108, %112 : vector<96x32xf32>
    %114 = vector.broadcast %93 : vector<1x32xf32> to vector<96x32xf32>
    %115 = arith.mulf %113, %114 : vector<96x32xf32>
    %116 = vector.broadcast %94 : vector<1x32xf32> to vector<96x32xf32>
    %117 = arith.addf %115, %116 : vector<96x32xf32>
    %c96 = arith.constant 96 : index
    %c0_38 = arith.constant 0 : index
    %118 = vector.load %arg5[%c96, %c0_38] : memref<216x128xf32, #tpu.memory_space<vmem>>, vector<32x64xf32>
    %119 = arith.truncf %118 : vector<32x64xf32> to vector<32x64xbf16>
    %c205 = arith.constant 205 : index
    %c0_39 = arith.constant 0 : index
    %120 = vector.load %arg5[%c205, %c0_39] : memref<216x128xf32, #tpu.memory_space<vmem>>, vector<1x64xf32>
    %121 = arith.truncf %117 : vector<96x32xf32> to vector<96x32xbf16>
    %cst_40 = arith.constant dense<0.000000e+00> : vector<96x64xf32>
    %122 = tpu.matmul %121, %119, %cst_40 {dimension_numbers = #tpu.dot_dimension_numbers<[1], [0], [0], [1], [0, 0, 1, 1], [], []>} : vector<96x32xbf16>, vector<32x64xbf16>, vector<96x64xf32> -> vector<96x64xf32>
    %123 = vector.broadcast %120 : vector<1x64xf32> to vector<96x64xf32>
    %124 = arith.addf %122, %123 : vector<96x64xf32>
    %125 = arith.mulf %124, %124 : vector<96x64xf32>
    %126 = arith.mulf %124, %125 : vector<96x64xf32>
    %cst_41 = arith.constant 4.471500e-02 : f32
    %127 = vector.broadcast %cst_41 : f32 to vector<96x64xf32>
    %128 = arith.mulf %127, %126 : vector<96x64xf32>
    %129 = arith.addf %124, %128 : vector<96x64xf32>
    %cst_42 = arith.constant 0.797884583 : f32
    %130 = vector.broadcast %cst_42 : f32 to vector<96x64xf32>
    %131 = arith.mulf %130, %129 : vector<96x64xf32>
    %132 = math.tanh %131 : vector<96x64xf32>
    %cst_43 = arith.constant 1.000000e+00 : f32
    %133 = vector.broadcast %cst_43 : f32 to vector<96x64xf32>
    %134 = arith.addf %133, %132 : vector<96x64xf32>
    %cst_44 = arith.constant 5.000000e-01 : f32
    %135 = vector.broadcast %cst_44 : f32 to vector<96x64xf32>
    %136 = arith.mulf %135, %134 : vector<96x64xf32>
    %137 = arith.mulf %124, %136 : vector<96x64xf32>
    %c128 = arith.constant 128 : index
    %c0_45 = arith.constant 0 : index
    %138 = vector.load %arg5[%c128, %c0_45] : memref<216x128xf32, #tpu.memory_space<vmem>>, vector<64x32xf32>
    %139 = arith.truncf %138 : vector<64x32xf32> to vector<64x32xbf16>
    %c206 = arith.constant 206 : index
    %c0_46 = arith.constant 0 : index
    %140 = vector.load %arg5[%c206, %c0_46] : memref<216x128xf32, #tpu.memory_space<vmem>>, vector<1x32xf32>
    %141 = arith.truncf %137 : vector<96x64xf32> to vector<96x64xbf16>
    %cst_47 = arith.constant dense<0.000000e+00> : vector<96x32xf32>
    %142 = tpu.matmul %141, %139, %cst_47 {dimension_numbers = #tpu.dot_dimension_numbers<[1], [0], [0], [1], [0, 0, 1, 1], [], []>} : vector<96x64xbf16>, vector<64x32xbf16>, vector<96x32xf32> -> vector<96x32xf32>
    %143 = vector.broadcast %140 : vector<1x32xf32> to vector<96x32xf32>
    %144 = arith.addf %142, %143 : vector<96x32xf32>
    %c209 = arith.constant 209 : index
    %c0_48 = arith.constant 0 : index
    %145 = vector.load %arg5[%c209, %c0_48] : memref<216x128xf32, #tpu.memory_space<vmem>>, vector<1x32xf32>
    %c210 = arith.constant 210 : index
    %c0_49 = arith.constant 0 : index
    %146 = vector.load %arg5[%c210, %c0_49] : memref<216x128xf32, #tpu.memory_space<vmem>>, vector<1x32xf32>
    %147 = arith.addf %117, %144 : vector<96x32xf32>
    %cst_50 = arith.constant dense<0.000000e+00> : vector<96xf32>
    %148 = vector.multi_reduction <add>, %147, %cst_50 [1] : vector<96x32xf32> to vector<96xf32>
    %149 = vector.shape_cast %148 : vector<96xf32> to vector<96x1xf32>
    %cst_51 = arith.constant 3.200000e+01 : f32
    %150 = vector.broadcast %cst_51 : f32 to vector<96x1xf32>
    %151 = arith.divf %149, %150 : vector<96x1xf32>
    %152 = vector.broadcast %151 : vector<96x1xf32> to vector<96x32xf32>
    %153 = arith.subf %147, %152 : vector<96x32xf32>
    %154 = arith.mulf %153, %153 : vector<96x32xf32>
    %cst_52 = arith.constant dense<0.000000e+00> : vector<96xf32>
    %155 = vector.multi_reduction <add>, %154, %cst_52 [1] : vector<96x32xf32> to vector<96xf32>
    %156 = vector.shape_cast %155 : vector<96xf32> to vector<96x1xf32>
    %cst_53 = arith.constant 3.200000e+01 : f32
    %157 = vector.broadcast %cst_53 : f32 to vector<96x1xf32>
    %158 = arith.divf %156, %157 : vector<96x1xf32>
    %159 = vector.broadcast %151 : vector<96x1xf32> to vector<96x32xf32>
    %160 = arith.subf %147, %159 : vector<96x32xf32>
    %cst_54 = arith.constant 9.99999996E-13 : f32
    %161 = vector.broadcast %cst_54 : f32 to vector<96x1xf32>
    %162 = arith.addf %158, %161 : vector<96x1xf32>
    %163 = math.rsqrt %162 : vector<96x1xf32>
    %164 = vector.broadcast %163 : vector<96x1xf32> to vector<96x32xf32>
    %165 = arith.mulf %160, %164 : vector<96x32xf32>
    %166 = vector.broadcast %145 : vector<1x32xf32> to vector<96x32xf32>
    %167 = arith.mulf %165, %166 : vector<96x32xf32>
    %168 = vector.broadcast %146 : vector<1x32xf32> to vector<96x32xf32>
    %169 = arith.addf %167, %168 : vector<96x32xf32>
    %170 = tpu.iota {dimensions = array<i32: 0>} : vector<12x96xi32>
    %171 = tpu.iota {dimensions = array<i32: 1>} : vector<12x96xi32>
    %c8_i32_55 = arith.constant 8 : i32
    %172 = vector.broadcast %c8_i32_55 : i32 to vector<12x96xi32>
    %173 = arith.muli %170, %172 : vector<12x96xi32>
    %174 = arith.cmpi eq, %171, %173 : vector<12x96xi32>
    %175 = arith.extui %174 : vector<12x96xi1> to vector<12x96xi32>
    %176 = arith.sitofp %175 : vector<12x96xi32> to vector<12x96xf32>
    %177 = arith.truncf %176 : vector<12x96xf32> to vector<12x96xbf16>
    %178 = arith.truncf %169 : vector<96x32xf32> to vector<96x32xbf16>
    %cst_56 = arith.constant dense<0.000000e+00> : vector<12x32xf32>
    %179 = tpu.matmul %177, %178, %cst_56 {dimension_numbers = #tpu.dot_dimension_numbers<[1], [0], [0], [1], [0, 0, 1, 1], [], []>} : vector<12x96xbf16>, vector<96x32xbf16>, vector<12x32xf32> -> vector<12x32xf32>
    %c64 = arith.constant 64 : index
    %c0_57 = arith.constant 0 : index
    %180 = vector.load %arg5[%c64, %c0_57] : memref<216x128xf32, #tpu.memory_space<vmem>>, vector<32x32xf32>
    %181 = arith.truncf %180 : vector<32x32xf32> to vector<32x32xbf16>
    %c204 = arith.constant 204 : index
    %c0_58 = arith.constant 0 : index
    %182 = vector.load %arg5[%c204, %c0_58] : memref<216x128xf32, #tpu.memory_space<vmem>>, vector<1x32xf32>
    %183 = arith.truncf %179 : vector<12x32xf32> to vector<12x32xbf16>
    %cst_59 = arith.constant dense<0.000000e+00> : vector<12x32xf32>
    %184 = tpu.matmul %183, %181, %cst_59 {dimension_numbers = #tpu.dot_dimension_numbers<[1], [0], [0], [1], [0, 0, 1, 1], [], []>} : vector<12x32xbf16>, vector<32x32xbf16>, vector<12x32xf32> -> vector<12x32xf32>
    %185 = vector.broadcast %182 : vector<1x32xf32> to vector<12x32xf32>
    %186 = arith.addf %184, %185 : vector<12x32xf32>
    %187 = math.tanh %186 : vector<12x32xf32>
    %188 = vector.extract_strided_slice %187 {offsets = [0, 0], sizes = [4, 32], strides = [1, 1]} : vector<12x32xf32> to vector<4x32xf32>
    %189 = vector.extract_strided_slice %187 {offsets = [4, 0], sizes = [4, 32], strides = [1, 1]} : vector<12x32xf32> to vector<4x32xf32>
    %190 = vector.extract_strided_slice %187 {offsets = [8, 0], sizes = [4, 32], strides = [1, 1]} : vector<12x32xf32> to vector<4x32xf32>
    %191 = arith.mulf %188, %189 : vector<4x32xf32>
    %cst_60 = arith.constant dense<0.000000e+00> : vector<4xf32>
    %192 = vector.multi_reduction <add>, %191, %cst_60 [1] : vector<4x32xf32> to vector<4xf32>
    %193 = vector.shape_cast %192 : vector<4xf32> to vector<4x1xf32>
    %194 = arith.mulf %188, %190 : vector<4x32xf32>
    %cst_61 = arith.constant dense<0.000000e+00> : vector<4xf32>
    %195 = vector.multi_reduction <add>, %194, %cst_61 [1] : vector<4x32xf32> to vector<4xf32>
    %196 = vector.shape_cast %195 : vector<4xf32> to vector<4x1xf32>
    %cst_62 = arith.constant dense<0xFF800000> : vector<4xf32>
    %197 = vector.multi_reduction <maximumf>, %193, %cst_62 [1] : vector<4x1xf32> to vector<4xf32>
    %198 = vector.shape_cast %197 : vector<4xf32> to vector<4x1xf32>
    %cst_63 = arith.constant dense<0xFF800000> : vector<4xf32>
    %199 = vector.multi_reduction <maximumf>, %196, %cst_63 [1] : vector<4x1xf32> to vector<4xf32>
    %200 = vector.shape_cast %199 : vector<4xf32> to vector<4x1xf32>
    %201 = arith.maximumf %198, %200 : vector<4x1xf32>
    %202 = arith.subf %193, %201 : vector<4x1xf32>
    %203 = math.exp %202 : vector<4x1xf32>
    %cst_64 = arith.constant dense<0.000000e+00> : vector<4xf32>
    %204 = vector.multi_reduction <add>, %203, %cst_64 [1] : vector<4x1xf32> to vector<4xf32>
    %205 = vector.shape_cast %204 : vector<4xf32> to vector<4x1xf32>
    %206 = arith.subf %196, %201 : vector<4x1xf32>
    %207 = math.exp %206 : vector<4x1xf32>
    %cst_65 = arith.constant dense<0.000000e+00> : vector<4xf32>
    %208 = vector.multi_reduction <add>, %207, %cst_65 [1] : vector<4x1xf32> to vector<4xf32>
    %209 = vector.shape_cast %208 : vector<4xf32> to vector<4x1xf32>
    %210 = arith.addf %205, %209 : vector<4x1xf32>
    %211 = math.log %210 : vector<4x1xf32>
    %212 = arith.addf %201, %211 : vector<4x1xf32>
    %213 = arith.subf %212, %193 : vector<4x1xf32>
    %cst_66 = arith.constant dense<0.000000e+00> : vector<1xf32>
    %214 = vector.multi_reduction <add>, %213, %cst_66 [0] : vector<4x1xf32> to vector<1xf32>
    %215 = vector.shape_cast %214 : vector<1xf32> to vector<1x1xf32>
    %cst_67 = arith.constant 2.500000e-01 : f32
    %216 = vector.broadcast %cst_67 : f32 to vector<1x1xf32>
    %217 = arith.mulf %215, %216 : vector<1x1xf32>
    %218 = tpu.iota {dimensions = array<i32: 1>} : vector<4x1xi32>
    %c0_i32_68 = arith.constant 0 : i32
    %219 = vector.broadcast %c0_i32_68 : i32 to vector<4x1xi32>
    %220 = arith.addi %218, %219 : vector<4x1xi32>
    %221 = tpu.iota {dimensions = array<i32: 1>} : vector<4x1xi32>
    %c1_i32_69 = arith.constant 1 : i32
    %222 = vector.broadcast %c1_i32_69 : i32 to vector<4x1xi32>
    %223 = arith.addi %221, %222 : vector<4x1xi32>
    %224 = arith.cmpf oge, %193, %201 : vector<4x1xf32>
    %c1073741824_i32 = arith.constant 1073741824 : i32
    %225 = vector.broadcast %c1073741824_i32 : i32 to vector<4x1xi32>
    %226 = arith.select %224, %220, %225 : vector<4x1xi1>, vector<4x1xi32>
    %cst_70 = arith.constant dense<2147483647> : vector<4xi32>
    %227 = vector.multi_reduction <minsi>, %226, %cst_70 [1] : vector<4x1xi32> to vector<4xi32>
    %228 = vector.shape_cast %227 : vector<4xi32> to vector<4x1xi32>
    %229 = arith.cmpf oge, %196, %201 : vector<4x1xf32>
    %c1073741824_i32_71 = arith.constant 1073741824 : i32
    %230 = vector.broadcast %c1073741824_i32_71 : i32 to vector<4x1xi32>
    %231 = arith.select %229, %223, %230 : vector<4x1xi1>, vector<4x1xi32>
    %cst_72 = arith.constant dense<2147483647> : vector<4xi32>
    %232 = vector.multi_reduction <minsi>, %231, %cst_72 [1] : vector<4x1xi32> to vector<4xi32>
    %233 = vector.shape_cast %232 : vector<4xi32> to vector<4x1xi32>
    %234 = arith.minsi %228, %233 : vector<4x1xi32>
    %235 = vector.shape_cast %217 : vector<1x1xf32> to vector<1x1xf32>
    %236 = vector.broadcast %235 : vector<1x1xf32> to vector<1x128xf32>
    %c0_73 = arith.constant 0 : index
    %c0_74 = arith.constant 0 : index
    %237 = vector.load %arg6[%c0_73, %c0_74] : memref<8x128xf32, #tpu.memory_space<vmem>>, vector<1x128xf32>
    tpu.vector_store %arg6[%c0_73, %c0_74], %236 {strides = array<i32>} : memref<8x128xf32, #tpu.memory_space<vmem>>, vector<1x128xf32>,
    %238 = arith.sitofp %234 : vector<4x1xi32> to vector<4x1xf32>
    %239 = vector.shape_cast %238 : vector<4x1xf32> to vector<4x1xf32>
    %240 = vector.broadcast %239 : vector<4x1xf32> to vector<4x128xf32>
    %c1 = arith.constant 1 : index
    %c0_75 = arith.constant 0 : index
    %241 = vector.load %arg6[%c1, %c0_75] : memref<8x128xf32, #tpu.memory_space<vmem>>, vector<4x128xf32>
    tpu.vector_store %arg6[%c1, %c0_75], %240 {strides = array<i32>} : memref<8x128xf32, #tpu.memory_space<vmem>>, vector<4x128xf32>,
    %cst_76 = arith.constant 0.000000e+00 : f32
    %242 = vector.broadcast %cst_76 : f32 to vector<1x1xf32>
    %243 = arith.mulf %217, %242 : vector<1x1xf32>
    %244 = vector.shape_cast %243 : vector<1x1xf32> to vector<1x1xf32>
    %245 = vector.broadcast %244 : vector<1x1xf32> to vector<3x128xf32>
    %c5 = arith.constant 5 : index
    %c0_77 = arith.constant 0 : index
    %246 = vector.load %arg6[%c5, %c0_77] : memref<8x128xf32, #tpu.memory_space<vmem>>, vector<3x128xf32>
    tpu.vector_store %arg6[%c5, %c0_77], %245 {strides = array<i32>} : memref<8x128xf32, #tpu.memory_space<vmem>>, vector<3x128xf32>,
    return
  }
}

</mosaic_0001>

<bundles_post_ra>
// kernel: _forward.1
= control target key start
LH: loop header
LB: loop body
LE: loop exit
PB: predicated region body
PF: predicated region fallthrough
CT: control target
= control target key end

     0   :  { %v36_v0 = vlaneseq  ;;  %v2759_v1 = vmov 0   ;;  %v2760_v29 = vmov 0.0   ;;  %vm360_vm3 = vcmask 1043456   ;;  %s2762_s17 = smov 96   ;;  %s2763_s18 = smov 64   ;;  %s3857_s0 = inlined_call_operand.vmem [shape: s32[96,1], index: 0, kind: input, shape index: {}]   ;;  %s3858_s1 = inlined_call_operand.vmem [shape: s32[96,1], index: 1, kind: input, shape index: {}]   ;;  %s3859_s4 = inlined_call_operand.vmem [shape: f32[128,32], index: 4, kind: input, shape index: {}]   ;;  %s3860_s5 = inlined_call_operand.vmem [shape: f32[216,128], index: 5, kind: input, shape index: {}]   ;;  %s3861_s2 = inlined_call_operand.vmem [shape: f32[1,96], index: 2, kind: input, shape index: {}]   ;;  %s3862_s3 = inlined_call_operand.vmem [shape: f32[96,96], index: 3, kind: input, shape index: {}]   ;;  %s3863_s6 = inlined_call_operand.vmem [shape: f32[8,128], index: 6, kind: output, shape index: {}]  }
   0x1   :  { %2628 = vset.pattern.permute.xlu1 %v2759_v1  ;;  %2627 = vset.pattern.permute.xlu0 %v2759_v1  ;;  %v26_v2 = vld [vmem:[%s3857_s0 + $0x10] sm:$0xff]  ;;  %v24_v3 = vld [vmem:[%s3857_s0] sm:$0xff]  ;;  %v27_v4 = vld [vmem:[%s3857_s0 + $0x18] sm:$0xff]  ;;  %vm341_vm5 = vcmask 64512  }
   0x2   :  { %45 = vperm.xlu1 %2628, %v26_v2   ;;  %39 = vperm.xlu0 %2627, %v24_v3   ;;  %v25_v5 = vld [vmem:[%s3857_s0 + $0x8] sm:$0xff]  ;;  %v2814_v6 = vshrl.u32 %v36_v0, 7  ;;  %v2816_v7 = vand.u32 127, %v36_v0  ;;  %v28_v10 = vld [vmem:[%s3857_s0 + $0x20] sm:$0xff]  ;;  %v31_v12 = vld [vmem:[%s3857_s0 + $0x38] sm:$0xff] }
   0x3   :  { %v29_v9 = vld [vmem:[%s3857_s0 + $0x28] sm:$0xff]  ;;  %v526_v14 = vld [vmem:[%s3858_s1] sm:$0xff]  ;;  %v130_v15 = vld [vmem:[%s3859_s4 + $0x70] sm:$0xff] }
   0x4   :  { %v157_v8 = vand.u32 7, %v2814_v6  ;;  %v2826_v11 = vadd.s32 8, %v2814_v6  ;;  %v527_v13 = vld [vmem:[%s3858_s1 + $0x8] sm:$0xff]  ;;  %v131_v16 = vld [vmem:[%s3859_s4 + $0x78] sm:$0xff]  ;;  %v30_v18 = vld [vmem:[%s3857_s0 + $0x30] sm:$0xff]  ;;  %v143_v23 = vadd.s32 16, %v2814_v6 }
   0x5   :  { %v128_v19 = vld [vmem:[%s3859_s4 + $0x60] sm:$0xff]  ;;  %v129_v20 = vld [vmem:[%s3859_s4 + $0x68] sm:$0xff]  ;;  %v139_v21 = vpack.c.bf16 %v131_v16, %v130_v15  ;;  %v144_v24 = vadd.s32 24, %v2814_v6  ;;  %vm541_vm1 = vcmp.gt.s32.totalorder %v527_v13, 0  ;;  %vm540_vm2 = vcmp.gt.s32.totalorder %v526_v14, 0  ;;  %v2866_v26 = vld [vmem:[%s3858_s1 + $0x18] sm:$0xff] }
   0x6   :  { %48 = vperm.xlu1 %2628, %v27_v4   ;;  %42 = vperm.xlu0 %2627, %v25_v5   ;;  %vm2844_vm0 = vcmp.eq.s32.totalorder %v157_v8, %v2816_v7  ;;  %v164_v22 = vand.u32 7, %v2826_v11  ;;  %v33_v25 = vld [vmem:[%s3857_s0 + $0x48] sm:$0xff]  ;;  %v2871_v27 = vld [vmem:[%s3858_s1 + $0x10] sm:$0xff]  ;;  %v138_v28 = vpack.c.bf16 %v129_v20, %v128_v19  ;;  %v127_v32 = vld [vmem:[%s3859_s4 + $0x58] sm:$0xff]  ;;  %v145_v34 = vadd.s32 32, %v2814_v6 }
   0x7   :  { %v2261_v30 = vsel %vm2844_vm0, 1.0, %v2760_v29  ;;  %v126_v31 = vld [vmem:[%s3859_s4 + $0x50] sm:$0xff]  ;;  %v339_v33 = vld [vmem:[%s3860_s5 + $0xc0] sm:$0xff]  ;;  %2446 = vmatprep.subr.bf16.mxu1 %v139_v21  ;;  %v125_v37 = vld [vmem:[%s3859_s4 + $0x48] sm:$0xff]  ;;  %v553_v40 = vsel %vm541_vm1, 1, %v2759_v1  ;;  %v552_v41 = vsel %vm540_vm2, 1, %v2759_v1 }
   0x8   :  { %vm298_vm4 = vcmp.eq.s32.totalorder %v164_v22, %v2816_v7  ;;  %v32_v35 = vld [vmem:[%s3857_s0 + $0x40] sm:$0xff]  ;;  %v340_v38 = vpack.c.bf16 %v339_v33, %v339_v33  ;;  %vm543_vm6 = vcmp.gt.s32.totalorder %v2866_v26, 0  ;;  %2447 = vmatpush3.bf16.msra.mxu1 %v139_v21  ;;  %v171_v43 = vand.u32 7, %v143_v23  ;;  %v35_v50 = vld [vmem:[%s3857_s0 + $0x58] sm:$0xff]  ;;  %v34_v51 = vld [vmem:[%s3857_s0 + $0x50] sm:$0xff] }
   0x9   :  { %v124_v36 = vld [vmem:[%s3859_s4 + $0x40] sm:$0xff]  ;;  %v2262_v39 = vsel %vm298_vm4, 1.0, %v2760_v29  ;;  %vm542_vm7 = vcmp.gt.s32.totalorder %v2871_v27, 0  ;;  %2448 = vmatprep.subr.bf16.mxu1 %v138_v28  ;;  %v137_v44 = vpack.c.bf16 %v127_v32, %v126_v31  ;;  %v178_v46 = vand.u32 7, %v144_v24  ;;  %v122_v62 = vld [vmem:[%s3859_s4 + $0x30] sm:$0xff]  ;;  %v123_v63 = vld [vmem:[%s3859_s4 + $0x38] sm:$0xff] }
   0xa   :  { %54 = vperm.xlu1 %2628, %v29_v9   ;;  %51 = vperm.xlu0 %2627, %v28_v10   ;;  %v333_v42 = vpack.c.bf16 %v2262_v39, %v2261_v30  ;;  %v362_v45 = vsel %vm360_vm3, %v340_v38, 0  ;;  %v136_v47 = vpack.c.bf16 %v125_v37, %v124_v36  ;;  %vm299_vm8 = vcmp.eq.s32.totalorder %v171_v43, %v2816_v7  ;;  %v531_v13 = vld [vmem:[%s3858_s1 + $0x28] sm:$0xff]  ;;  %v530_v14 = vld [vmem:[%s3858_s1 + $0x20] sm:$0xff]  ;;  %v532_v26 = vld [vmem:[%s3858_s1 + $0x30] sm:$0xff] }
   0xb   :  { %2614 = vmatprep.subr.msk.bf16.mxu0 %vm360_vm3, %v340_v38  ;;  %v146_v48 = vadd.s32 40, %v2814_v6  ;;  %v185_v49 = vand.u32 7, %v145_v34  ;;  %vm300_vm9 = vcmp.eq.s32.totalorder %v178_v46, %v2816_v7  ;;  %v2263_v52 = vsel %vm299_vm8, 1.0, %v2760_v29  ;;  %v121_v19 = vld [vmem:[%s3859_s4 + $0x28] sm:$0xff]  ;;  %v118_v30 = vld [vmem:[%s3859_s4 + $0x10] sm:$0xff]  ;;  %v119_v31 = vld [vmem:[%s3859_s4 + $0x18] sm:$0xff] }
   0xc   :  { %2433 = vmatpush3.bf16.msra.mxu0 %v362_v45  ;;  %2434 = vmatprep.mubr.msk.bf16.mxu0 %vm341_vm5, %v333_v42  ;;  %v147_v53 = vadd.s32 48, %v2814_v6  ;;  %v148_v54 = vadd.s32 56, %v2814_v6  ;;  %v2264_v55 = vsel %vm300_vm9, 1.0, %v2760_v29  ;;  %v149_v57 = vadd.s32 64, %v2814_v6  ;;  %v535_v36 = vld [vmem:[%s3858_s1 + $0x48] sm:$0xff]  ;;  %v534_v37 = vld [vmem:[%s3858_s1 + $0x40] sm:$0xff] }
   0xd   :  { %2449 = vmatpush3.bf16.msra.mxu1 %v138_v28  ;;  %v192_v56 = vand.u32 7, %v146_v48  ;;  %vm301_vm10 = vcmp.eq.s32.totalorder %v185_v49, %v2816_v7  ;;  %v334_v58 = vpack.c.bf16 %v2264_v55, %v2263_v52  ;;  %v150_v0 = vadd.s32 72, %v2814_v6  ;;  %v533_v28 = vld [vmem:[%s3858_s1 + $0x38] sm:$0xff]  ;;  %v116_v39 = vld [vmem:[%s3859_s4] sm:$0xff]  ;;  %v536_v45 = vld [vmem:[%s3858_s1 + $0x50] sm:$0xff] }
   0xe   :  { %60 = vperm.xlu1 %2628, %v31_v12   ;;  %57 = vperm.xlu0 %2627, %v30_v18   ;;  %v2265_v59 = vsel %vm301_vm10, 1.0, %v2760_v29  ;;  %v199_v60 = vand.u32 7, %v147_v53  ;;  %v206_v61 = vand.u32 7, %v148_v54  ;;  %v213_v2 = vand.u32 7, %v149_v57  ;;  %v120_v18 = vld [vmem:[%s3859_s4 + $0x20] sm:$0xff]  ;;  %v653_v52 = vld [vmem:[%s3860_s5 + $0x18] sm:$0xff] }
   0xf   :  { %2450 = vmatprep.subr.bf16.mxu1 %v137_v44  ;;  %vm302_vm11 = vcmp.eq.s32.totalorder %v192_v56, %v2816_v7  ;;  %v151_v3 = vadd.s32 80, %v2814_v6  ;;  %2435 = vmatmul.mubr.msk.bf16.vlgmr.msra.gmra.mxu0 %vm341_vm5, %v334_v58  ;;  %v152_v5 = vadd.s32 88, %v2814_v6  ;;  %v220_v12 = vand.u32 7, %v150_v0 }
  0x10   :  { %v2266_v4 = vsel %vm302_vm11, 1.0, %v2760_v29  ;;  %vm303_vm12 = vcmp.eq.s32.totalorder %v199_v60, %v2816_v7  ;;  %vm304_vm13 = vcmp.eq.s32.totalorder %v206_v61, %v2816_v7  ;;  %v135_v15 = vpack.c.bf16 %v123_v63, %v122_v62 }
  0x11   :  { %2451 = vmatpush3.bf16.msra.mxu1 %v137_v44  ;;  %v335_v8 = vpack.c.bf16 %v2266_v4, %v2265_v59  ;;  %v2267_v9 = vsel %vm303_vm12, 1.0, %v2760_v29  ;;  %v2268_v10 = vsel %vm304_vm13, 1.0, %v2760_v29  ;;  %vm305_vm14 = vcmp.eq.s32.totalorder %v213_v2, %v2816_v7  ;;  %v537_v44 = vld [vmem:[%s3858_s1 + $0x58] sm:$0xff]  ;;  %v651_v4 = vld [vmem:[%s3860_s5 + $0x8] sm:$0xff] }
  0x12   :  { %66 = vperm.xlu1 %2628, %v33_v25   ;;  %63 = vperm.xlu0 %2627, %v32_v35   ;;  %v227_v16 = vand.u32 7, %v151_v3  ;;  %v234_v17 = vand.u32 7, %v152_v5  ;;  %vm306_vm15 = vcmp.eq.s32.totalorder %v220_v12, %v2816_v7  ;;  %v2269_v20 = vsel %vm305_vm14, 1.0, %v2760_v29  ;;  %v650_v3 = vld [vmem:[%s3860_s5] sm:$0xff] }
  0x13   :  { %2452 = vmatprep.subr.bf16.mxu1 %v136_v47  ;;  %v555_v21 = vsel %vm543_vm6, 1, %v2759_v1  ;;  %v554_v22 = vsel %vm542_vm7, 1, %v2759_v1  ;;  %2438 = vmatprep.mubr.msk.bf16.mxu0 %vm341_vm5, %v335_v8  ;;  %v336_v23 = vpack.c.bf16 %v2268_v10, %v2267_v9  ;;  %v2270_v24 = vsel %vm306_vm15, 1.0, %v2760_v29 }
  0x14   :  { %vm545_vm0 = vcmp.gt.s32.totalorder %v531_v13, 0  ;;  %vm544_vm1 = vcmp.gt.s32.totalorder %v530_v14, 0  ;;  %v337_v25 = vpack.c.bf16 %v2270_v24, %v2269_v20  ;;  %v134_v27 = vpack.c.bf16 %v121_v19, %v120_v18 }
  0x15   :  { %2453 = vmatpush3.bf16.msra.mxu1 %v136_v47  ;;  %vm307_vm2 = vcmp.eq.s32.totalorder %v227_v16, %v2816_v7  ;;  %vm308_vm4 = vcmp.eq.s32.totalorder %v234_v17, %v2816_v7  ;;  %v557_v32 = vsel %vm545_vm0, 1, %v2759_v1  ;;  %v556_v33 = vsel %vm544_vm1, 1, %v2759_v1 }
  0x16   :  { %72 = vperm.xlu1 %2628, %v35_v50   ;;  %69 = vperm.xlu0 %2627, %v34_v51   ;;  %vm547_vm6 = vcmp.gt.s32.totalorder %v533_v28, 0  ;;  %vm546_vm7 = vcmp.gt.s32.totalorder %v532_v26, 0  ;;  %v2271_v34 = vsel %vm307_vm2, 1.0, %v2760_v29  ;;  %v2272_v35 = vsel %vm308_vm4, 1.0, %v2760_v29  ;;  %v652_v51 = vld [vmem:[%s3860_s5 + $0x10] sm:$0xff] }
  0x17   :  { %2454 = vmatprep.subr.bf16.mxu1 %v135_v15  ;;  %2439 = vmatmul.mubr.msk.bf16.gmra.mxu0 %vm341_vm5, %v336_v23  ;;  %v133_v38 = vpack.c.bf16 %v119_v31, %v118_v30  ;;  %v558_v42 = vsel %vm546_vm7, 1, %v2759_v1  ;;  %v338_v43 = vpack.c.bf16 %v2272_v35, %v2271_v34  ;;  %vm549_vm8 = vcmp.gt.s32.totalorder %v535_v36, 0  ;;  %v3038_v28 = vld [vmem:[%s3860_s5 + $0xc9] ss:$0 sm:$0xff] }
  0x18   :  { %2442 = vmatprep.mubr.msk.bf16.mxu0 %vm341_vm5, %v337_v25  ;;  %vm548_vm9 = vcmp.gt.s32.totalorder %v534_v37, 0  ;;  %v561_v47 = vsel %vm549_vm8, 1, %v2759_v1  ;;  %vm551_vm10 = vcmp.gt.s32.totalorder %v537_v44, 0  ;;  %vm550_vm11 = vcmp.gt.s32.totalorder %v536_v45, 0  ;;  %v3033_v25 = vld [vmem:[%s3860_s5 + $0xc8] ss:$0 sm:$0xff] }
  0x19   :  { %2455 = vmatpush3.bf16.msra.mxu1 %v135_v15  ;;  %v560_v48 = vsel %vm548_vm9, 1, %v2759_v1  ;;  %v563_v49 = vsel %vm551_vm10, 1, %v2759_v1  ;;  %v562_v50 = vsel %vm550_vm11, 1, %v2759_v1  ;;  %v655_v53 = vpack.c.bf16 %v653_v52, %v652_v51 }
  0x1a   :  { %568 = vperm.xlu1 %2628, %v553_v40   ;;  %565 = vperm.xlu0 %2627, %v552_v41   ;;  %v117_v40 = vld [vmem:[%s3859_s4 + $0x8] sm:$0xff]  ;;  %v559_v41 = vsel %vm547_vm6, 1, %v2759_v1  ;;  %v2761_v1 = vmov 1.0|1.0   ;;  %v654_v5 = vpack.c.bf16 %v651_v4, %v650_v3 }
  0x1b   :  { %2456 = vmatprep.subr.bf16.mxu1 %v134_v27  ;;  %v132_v46 = vpack.c.bf16 %v117_v40, %v116_v39  ;;  %2474 = vmatprep.subr.bf16.mxu0 %v655_v53 }
  0x1c   :  { %2475 = vmatpush3.bf16.msra.mxu0 %v655_v53 }
  0x1d   :  { %2457 = vmatpush3.bf16.msra.mxu1 %v134_v27  ;;  %2476 = vmatprep.subr.bf16.mxu0 %v654_v5 }
  0x1e   :  { %574 = vperm.xlu1 %2628, %v555_v21   ;;  %571 = vperm.xlu0 %2627, %v554_v22  }
  0x1f   :  { %2458 = vmatprep.subr.bf16.mxu1 %v133_v38  ;;  %2443 = vmatmul.mubr.msk.bf16.gmra.mxu0 %vm341_vm5, %v338_v43 }
  0x20   :  { %2477 = vmatpush3.bf16.msra.mxu0 %v654_v5 }
  0x21   :  { %2459 = vmatpush3.bf16.msra.mxu1 %v133_v38 }
  0x22   :  { %580 = vperm.xlu1 %2628, %v557_v32   ;;  %577 = vperm.xlu0 %2627, %v556_v33  }
  0x23   :  { %2460 = vmatprep.subr.bf16.mxu1 %v132_v46 }
  0x25   :  { %2461 = vmatpush3.bf16.msra.mxu1 %v132_v46 }
  0x26   :  { %586 = vperm.xlu1 %2628, %v559_v41   ;;  %583 = vperm.xlu0 %2627, %v558_v42  }
  0x2a   :  { %592 = vperm.xlu1 %2628, %v561_v47   ;;  %589 = vperm.xlu0 %2627, %v560_v48  }
  0x2e   :  { %598 = vperm.xlu1 %2628, %v563_v49   ;;  %595 = vperm.xlu0 %2627, %v562_v50  }
  0x7d   :  { %v46_v54 = vpop.permute.xlu1 %45  ;;  %v40_v55 = vpop.permute.xlu0 %39 }
  0x7e   :  { %vm76_vm5 = vcmp.eq.s32.totalorder %v2816_v7, %v46_v54  ;;  %vm74_vm15 = vcmp.eq.s32.totalorder %v2816_v7, %v40_v55 }
  0x81   :  { %v49_v56 = vpop.permute.xlu1 %48  ;;  %v43_v57 = vpop.permute.xlu0 %42 }
  0x82   :  { %vm77_vm12 = vcmp.eq.s32.totalorder %v2816_v7, %v49_v56  ;;  %vm75_vm13 = vcmp.eq.s32.totalorder %v2816_v7, %v43_v57 }
  0x83   :  { %vm2281_vm14 = vmpackc.low %vm77_vm12, %vm76_vm5 }
  0x84   :  { %vm2279_vm0 = vmpackc.low %vm75_vm13, %vm74_vm15 }
  0x85   :  { %2462 = vmatprep.mubr.msk.bf16.mxu1 %vm2279_vm0, %v2761_v1  ;;  %v55_v58 = vpop.permute.xlu1 %54  ;;  %v52_v59 = vpop.permute.xlu0 %51 }
  0x86   :  { %vm79_vm1 = vcmp.eq.s32.totalorder %v2816_v7, %v55_v58  ;;  %2463 = vmatmul.mubr.msk.bf16.vlgmr.msra.gmra.mxu1 %vm2281_vm14, %v2761_v1  ;;  %vm78_vm2 = vcmp.eq.s32.totalorder %v2816_v7, %v52_v59 }
  0x87   :  { %vm2283_vm4 = vmpackc.low %vm79_vm1, %vm78_vm2  ;;  %vm661_vm2 = vcmask 261120  }
  0x88   :  { %2466 = vmatprep.mubr.msk.bf16.mxu1 %vm2283_vm4, %v2761_v1 }
  0x89   :  { %v61_v60 = vpop.permute.xlu1 %60  ;;  %v58_v61 = vpop.permute.xlu0 %57 }
  0x8a   :  { %vm81_vm6 = vcmp.eq.s32.totalorder %v2816_v7, %v61_v60  ;;  %vm80_vm7 = vcmp.eq.s32.totalorder %v2816_v7, %v58_v61 }
  0x8b   :  { %vm2285_vm8 = vmpackc.low %vm81_vm6, %vm80_vm7 }
  0x8d   :  { %v67_v62 = vpop.permute.xlu1 %66  ;;  %v64_v63 = vpop.permute.xlu0 %63 }
  0x8e   :  { %vm83_vm9 = vcmp.eq.s32.totalorder %v2816_v7, %v67_v62  ;;  %2467 = vmatmul.mubr.msk.bf16.gmra.mxu1 %vm2285_vm8, %v2761_v1  ;;  %vm82_vm10 = vcmp.eq.s32.totalorder %v2816_v7, %v64_v63 }
  0x8f   :  { %vm2287_vm11 = vmpackc.low %vm83_vm9, %vm82_vm10 }
  0x90   :  { %2470 = vmatprep.mubr.msk.bf16.mxu1 %vm2287_vm11, %v2761_v1 }
  0x91   :  { %v73_v0 = vpop.permute.xlu1 %72  ;;  %v70_v2 = vpop.permute.xlu0 %69 }
  0x92   :  { %vm85_vm5 = vcmp.eq.s32.totalorder %v2816_v7, %v73_v0  ;;  %vm84_vm12 = vcmp.eq.s32.totalorder %v2816_v7, %v70_v2 }
  0x93   :  { %vm2289_vm13 = vmpackc.low %vm85_vm5, %vm84_vm12  ;;  %vm953_vm12 = vcmask 785408  }
  0x95   :  { %v569_v12 = vpop.permute.xlu1 %568  ;;  %v566_v13 = vpop.permute.xlu0 %565 }
  0x96   :  { %2471 = vmatmul.mubr.msk.bf16.gmra.mxu1 %vm2289_vm13, %v2761_v1  ;;  %vm601_vm15 = vcmp.eq.s32.totalorder %v569_v12, 1  ;;  %vm600_vm0 = vcmp.eq.s32.totalorder %v566_v13, 1  ;;  %vm1775_vm13 = vcmask 523264  }
  0x97   :  { %v621_v37 = vsel %vm601_vm15, %v3038_v28, %v3033_v25  ;;  %v620_v38 = vsel %vm600_vm0, %v3038_v28, %v3033_v25 }
  0x99   :  { %v575_v15 = vpop.permute.xlu1 %574  ;;  %v572_v17 = vpop.permute.xlu0 %571 }
  0x9a   :  { %vm603_vm14 = vcmp.eq.s32.totalorder %v575_v15, 1  ;;  %vm602_vm1 = vcmp.eq.s32.totalorder %v572_v17, 1 }
  0x9b   :  { %v623_v34 = vsel %vm603_vm14, %v3038_v28, %v3033_v25  ;;  %v622_v41 = vsel %vm602_vm1, %v3038_v28, %v3033_v25  ;;  %vm2764_vm14 = vmmov 0   ;;  %vm2198_vm1 = vcmask 257024  }
  0x9d   :  { %v581_v19 = vpop.permute.xlu1 %580  ;;  %v578_v21 = vpop.permute.xlu0 %577 }
  0x9e   :  { %vm605_vm6 = vcmp.eq.s32.totalorder %v581_v19, 1  ;;  %vm604_vm7 = vcmp.eq.s32.totalorder %v578_v21, 1 }
  0x9f   :  { %v625_v58 = vsel %vm605_vm6, %v3038_v28, %v3033_v25  ;;  %v624_v59 = vsel %vm604_vm7, %v3038_v28, %v3033_v25 }
  0xa1   :  { %v587_v26 = vpop.permute.xlu1 %586  ;;  %v584_v35 = vpop.permute.xlu0 %583 }
  0xa2   :  { %vm607_vm4 = vcmp.eq.s32.totalorder %v587_v26, 1  ;;  %vm606_vm8 = vcmp.eq.s32.totalorder %v584_v35, 1 }
  0xa3   :  { %v627_v57 = vsel %vm607_vm4, %v3038_v28, %v3033_v25  ;;  %v626_v62 = vsel %vm606_vm8, %v3038_v28, %v3033_v25 }
  0xa5   :  { %v593_v47 = vpop.permute.xlu1 %592  ;;  %v590_v51 = vpop.permute.xlu0 %589 }
  0xa6   :  { %vm609_vm10 = vcmp.eq.s32.totalorder %v593_v47, 1  ;;  %vm608_vm11 = vcmp.eq.s32.totalorder %v590_v51, 1 }
  0xa7   :  { %v628_v21 = vsel %vm608_vm11, %v3038_v28, %v3033_v25 }
  0xa9   :  { %v599_v63 = vpop.permute.xlu1 %598 }
  0xaa   :  { %vm611_vm9 = vcmp.eq.s32.totalorder %v599_v63, 1 }
  0xcf   :  { %v2436_v8 = vpop.f32.mrf.mxu0 }
  0xd1   :  { %v398_v9 = vpop.f32.mrf.mxu0 }
  0xd3   :  { %v2437_v10 = vpop.f32.mrf.mxu0 }
  0xd5   :  { %v401_v14 = vpop.f32.mrf.mxu0 }
  0xd7   :  { %v2440_v16 = vpop.f32.mrf.mxu0 }
  0xd9   :  { %v414_v18 = vpop.f32.mrf.mxu0 }
  0xdb   :  { %v2441_v23 = vpop.f32.mrf.mxu0 }
  0xdd   :  { %v417_v33 = vpop.f32.mrf.mxu0 }
  0xdf   :  { %v2444_v45 = vpop.f32.mrf.mxu0 }
  0xe1   :  { %v430_v55 = vpop.f32.mrf.mxu0 }
  0xe3   :  { %v2445_v4 = vpop.f32.mrf.mxu0 }
  0xe5   :  { %v433_v15 = vpop.f32.mrf.mxu0 }
 0x146   :  { %v2464_v20 = vpop.f32.mrf.mxu1 }
 0x147   :  { %v488_v31 = vadd.f32 %v2464_v20, %v2436_v8  ;;  %v596_v8 = vpop.permute.xlu0 %595  ;;  %v629_v20 = vsel %vm609_vm10, %v3038_v28, %v3033_v25 }
 0x148   :  { %v479_v22 = vpop.f32.mrf.mxu1  ;;  %vm610_vm5 = vcmp.eq.s32.totalorder %v596_v8, 1 }
 0x149   :  { %v480_v27 = vadd.f32 %v479_v22, %v398_v9  ;;  %v3054_v44 = vadd.f32 %v622_v41, %v488_v31 }
 0x14a   :  { %v2465_v24 = vpop.f32.mrf.mxu1 }
 0x14b   :  { %v491_v30 = vadd.f32 %v2465_v24, %v2437_v10  ;;  %v3050_v42 = vadd.f32 %v620_v38, %v480_v27 }
 0x14c   :  { %v482_v32 = vpop.f32.mrf.mxu1 }
 0x14d   :  { %v483_v36 = vadd.f32 %v482_v32, %v401_v14  ;;  %v3046_v39 = vadd.f32 %v623_v34, %v491_v30 }
 0x14e   :  { %v2468_v40 = vpop.f32.mrf.mxu1 }
 0x14f   :  { %v3052_v43 = vadd.f32 %v621_v37, %v483_v36  ;;  %v645_v49 = vpack.c.bf16 %v3046_v39, %v3054_v44  ;;  %v504_v54 = vadd.f32 %v2468_v40, %v2440_v16 }
 0x150   :  { %v495_v46 = vpop.f32.mrf.mxu1 }
 0x151   :  { %v644_v48 = vpack.c.bf16 %v3052_v43, %v3050_v42  ;;  %v496_v52 = vadd.f32 %v495_v46, %v414_v18  ;;  %v3076_v3 = vadd.f32 %v626_v62, %v504_v54  ;;  %v631_v18 = vsel %vm611_vm9, %v3038_v28, %v3033_v25 }
 0x152   :  { %v2469_v50 = vpop.f32.mrf.mxu1 }
 0x153   :  { %v507_v53 = vadd.f32 %v2469_v50, %v2441_v23  ;;  %2478 = vmatprep.mubr.msk.bf16.mxu0 %vm661_vm2, %v644_v48  ;;  %v3072_v0 = vadd.f32 %v624_v59, %v496_v52  ;;  %v630_v23 = vsel %vm610_vm5, %v3038_v28, %v3033_v25  ;;  %v2293_v25 = vld [vmem:[%s3860_s5 + $0xca] ss:$0 sm:$0xff] }
 0x154   :  { %v498_v56 = vpop.f32.mrf.mxu1  ;;  %2479 = vmatmul.mubr.msk.bf16.vlgmr.msra.gmra.mxu0 %vm661_vm2, %v645_v49 }
 0x155   :  { %v499_v1 = vadd.f32 %v498_v56, %v417_v33  ;;  %v3068_v60 = vadd.f32 %v627_v57, %v507_v53 }
 0x156   :  { %v2472_v61 = vpop.f32.mrf.mxu1 }
 0x157   :  { %v3074_v2 = vadd.f32 %v625_v58, %v499_v1  ;;  %v647_v10 = vpack.c.bf16 %v3068_v60, %v3076_v3  ;;  %v520_v16 = vadd.f32 %v2472_v61, %v2444_v45 }
 0x158   :  { %v511_v5 = vpop.f32.mrf.mxu1 }
 0x159   :  { %v646_v9 = vpack.c.bf16 %v3074_v2, %v3072_v0  ;;  %v512_v13 = vadd.f32 %v511_v5, %v430_v55  ;;  %v3098_v27 = vadd.f32 %v630_v23, %v520_v16 }
 0x15a   :  { %v2473_v12 = vpop.f32.mrf.mxu1 }
 0x15b   :  { %v523_v14 = vadd.f32 %v2473_v12, %v2445_v4  ;;  %2482 = vmatprep.mubr.msk.bf16.mxu0 %vm661_vm2, %v646_v9  ;;  %v3094_v24 = vadd.f32 %v628_v21, %v512_v13 }
 0x15c   :  { %v514_v17 = vpop.f32.mrf.mxu1  ;;  %2483 = vmatmul.mubr.msk.bf16.gmra.mxu0 %vm661_vm2, %v647_v10 }
 0x15d   :  { %v515_v19 = vadd.f32 %v514_v17, %v433_v15  ;;  %v3090_v22 = vadd.f32 %v631_v18, %v523_v14 }
 0x15f   :  { %v3096_v26 = vadd.f32 %v629_v20, %v515_v19  ;;  %v649_v31 = vpack.c.bf16 %v3090_v22, %v3098_v27 }
 0x161   :  { %v648_v30 = vpack.c.bf16 %v3096_v26, %v3094_v24 }
 0x163   :  { %2486 = vmatprep.mubr.msk.bf16.mxu0 %vm661_vm2, %v648_v30 }
 0x164   :  { %2487 = vmatmul.mubr.msk.bf16.gmra.mxu0 %vm661_vm2, %v649_v31 }
 0x214   :  { %v2480_v32 = vpop.f32.mrf.mxu0 }
 0x215   :  { %v723_v33 = vadd.f32 %v2480_v32, %v2293_v25 }
 0x216   :  { %v714_v28 = vpop.f32.mrf.mxu0 }
 0x217   :  { %v715_v35 = vadd.f32 %v2293_v25, %v714_v28  ;;  %v3109_v38 = vmul.f32 0.17677669, %v723_v33 }
 0x218   :  { %v2481_v34 = vpop.f32.mrf.mxu0 }
 0x219   :  { %v726_v36 = vadd.f32 %v2481_v34, %v2293_v25  ;;  %v761_v46 = vmul.f32 0.17677669, %v715_v35 }
 0x21a   :  { %v717_v37 = vpop.f32.mrf.mxu0 }
 0x21b   :  { %v3111_v40 = vmul.f32 0.17677669, %v726_v36  ;;  %v718_v41 = vadd.f32 %v2293_v25, %v717_v37  ;;  %v3133_v31 = vpack.c.bf16 %v726_v36, %v723_v33 }
 0x21c   :  { %v2484_v45 = vpop.f32.mrf.mxu0 }
 0x21d   :  { %v774_v47 = vpack.c.bf16 %v3111_v40, %v3109_v38  ;;  %v762_v48 = vmul.f32 0.17677669, %v718_v41  ;;  %v739_v51 = vadd.f32 %v2484_v45, %v2293_v25  ;;  %v3136_v32 = vpack.c.bf16 %v718_v41, %v715_v35  ;;  %v790_v40 = vld [vmem:[%s3862_s3 + $0x10] sm:$0xff] }
 0x21e   :  { %v730_v49 = vpop.f32.mrf.mxu0  ;;  %v938_v38 = vsub.s32 0, %v2814_v6 }
 0x21f   :  { %v773_v50 = vpack.c.bf16 %v762_v48, %v761_v46  ;;  %v731_v53 = vadd.f32 %v2293_v25, %v730_v49  ;;  %v3116_v56 = vmul.f32 0.17677669, %v739_v51 }
 0x220   :  { %v2485_v52 = vpop.f32.mrf.mxu0 }
 0x221   :  { %v742_v54 = vadd.f32 %v2485_v52, %v2293_v25  ;;  %2502 = vmatprep.mubr.msk.bf16.mxu0 %vm661_vm2, %v773_v50  ;;  %v3120_v59 = vmul.f32 0.17677669, %v731_v53  ;;  %v785_v52 = vld [vmem:[%s3861_s2] sm:$0x1] }
 0x222   :  { %v733_v55 = vpop.f32.mrf.mxu0 }
 0x223   :  { %v3118_v57 = vmul.f32 0.17677669, %v742_v54  ;;  %v734_v1 = vadd.f32 %v2293_v25, %v733_v55  ;;  %v3128_v21 = vpack.c.bf16 %v742_v54, %v739_v51 }
 0x224   :  { %v2488_v58 = vpop.f32.mrf.mxu0 }
 0x225   :  { %v776_v61 = vpack.c.bf16 %v3118_v57, %v3116_v56  ;;  %v3124_v62 = vmul.f32 0.17677669, %v734_v1  ;;  %v755_v5 = vadd.f32 %v2488_v58, %v2293_v25  ;;  %v3130_v30 = vpack.c.bf16 %v734_v1, %v731_v53  ;;  %v788_v56 = vld [vmem:[%s3862_s3] sm:$0xff]  ;;  %v791_v58 = vld [vmem:[%s3862_s3 + $0x18] sm:$0xff] }
 0x226   :  { %v746_v63 = vpop.f32.mrf.mxu0  ;;  %v2300_v53 = vadd.f32 -1.0, %v785_v52 }
 0x227   :  { %v775_v4 = vpack.c.bf16 %v3124_v62, %v3120_v59  ;;  %v747_v9 = vadd.f32 %v2293_v25, %v746_v63  ;;  %v771_v13 = vmul.f32 0.17677669, %v755_v5  ;;  %v789_v63 = vld [vmem:[%s3862_s3 + $0x8] sm:$0xff] }
 0x228   :  { %v2489_v8 = vpop.f32.mrf.mxu0  ;;  %v787_v54 = vmul.f32 1e+09, %v2300_v53 }
 0x229   :  { %v758_v10 = vadd.f32 %v2489_v8, %v2293_v25  ;;  %v769_v17 = vmul.f32 0.17677669, %v747_v9 }
 0x22a   :  { %v749_v12 = vpop.f32.mrf.mxu0 }
 0x22b   :  { %v772_v14 = vmul.f32 0.17677669, %v758_v10  ;;  %v784_v15 = vpack.c.bf16 %v758_v10, %v755_v5  ;;  %v750_v16 = vadd.f32 %v2293_v25, %v749_v12  ;;  %v794_v10 = vld [vmem:[%s3862_s3 + $0x30] sm:$0xff] }
 0x22d   :  { %v778_v18 = vpack.c.bf16 %v772_v14, %v771_v13  ;;  %v770_v19 = vmul.f32 0.17677669, %v750_v16  ;;  %v783_v20 = vpack.c.bf16 %v750_v16, %v747_v9  ;;  %816 = vrot.lane.b32.xlu0 %v784_v15, %s2762_s17  ;;  %v792_v14 = vld [vmem:[%s3862_s3 + $0x20] sm:$0xff] }
 0x22f   :  { %v777_v23 = vpack.c.bf16 %v770_v19, %v769_v17  ;;  %814 = vrot.lane.b32.xlu1 %v783_v20, %s2762_s17 }
 0x231   :  { %812 = vrot.lane.b32.xlu0 %v3128_v21, %s2762_s17 }
 0x233   :  { %810 = vrot.lane.b32.xlu1 %v3130_v30, %s2762_s17 }
 0x235   :  { %808 = vrot.lane.b32.xlu0 %v3133_v31, %s2762_s17 }
 0x237   :  { %806 = vrot.lane.b32.xlu1 %v3136_v32, %s2762_s17 }
 0x23b   :  { %1102 = vrot.lane.b32.xlu1 %v784_v15, %s2763_s18 }
 0x23f   :  { %1100 = vrot.lane.b32.xlu1 %v783_v20, %s2763_s18  ;;  %v795_v20 = vld [vmem:[%s3862_s3 + $0x38] sm:$0xff] }
 0x29f   :  { %v817_v25 = vpop.permute.xlu0 %816 }
 0x2a0   :  { %v852_v28 = vsel %vm661_vm2, %v817_v25, 0  ;;  %2615 = vmatprep.subr.msk.bf16.mxu0 %vm661_vm2, %v817_v25 }
 0x2a1   :  { %2491 = vmatpush3.bf16.xpose.msra.mxu0 %v852_v28  ;;  %v815_v33 = vpop.permute.xlu1 %814 }
 0x2a2   :  { %2616 = vmatprep.subr.msk.bf16.mxu0 %vm661_vm2, %v815_v33  ;;  %v849_v35 = vsel %vm661_vm2, %v815_v33, 0 }
 0x2a3   :  { %v813_v36 = vpop.permute.xlu0 %812 }
 0x2a4   :  { %v846_v45 = vsel %vm661_vm2, %v813_v36, 0 }
 0x2a5   :  { %v811_v34 = vpop.permute.xlu1 %810 }
 0x2a6   :  { %v843_v48 = vsel %vm661_vm2, %v811_v34, 0 }
 0x2a7   :  { %v809_v49 = vpop.permute.xlu0 %808 }
 0x2a8   :  { %v840_v50 = vsel %vm661_vm2, %v809_v49, 0 }
 0x2a9   :  { %2493 = vmatpush3.bf16.xpose.msra.mxu0 %v849_v35  ;;  %v807_v37 = vpop.permute.xlu1 %806 }
 0x2aa   :  { %2617 = vmatprep.subr.msk.bf16.mxu0 %vm661_vm2, %v813_v36  ;;  %v837_v51 = vsel %vm661_vm2, %v807_v37, 0 }
 0x2ad   :  { %v1103_v41 = vpop.permute.xlu1 %1102 }
 0x2ae   :  { %2514 = vmatprep.subr.bf16.mxu1 %v1103_v41 }
 0x2af   :  { %2515 = vmatpush3.bf16.msra.mxu1 %v1103_v41  ;;  %v798_v41 = vld [vmem:[%s3862_s3 + $0x50] sm:$0xff] }
 0x2b1   :  { %2495 = vmatpush3.bf16.xpose.msra.mxu0 %v846_v45  ;;  %v1101_v46 = vpop.permute.xlu1 %1100 }
 0x2b2   :  { %2618 = vmatprep.subr.msk.bf16.mxu0 %vm661_vm2, %v811_v34  ;;  %2516 = vmatprep.subr.bf16.mxu1 %v1101_v46  ;;  %v793_v34 = vld [vmem:[%s3862_s3 + $0x28] sm:$0xff] }
 0x2b3   :  { %2517 = vmatpush3.bf16.msra.mxu1 %v1101_v46 }
 0x2b9   :  { %2497 = vmatpush3.bf16.xpose.msra.mxu0 %v843_v48 }
 0x2ba   :  { %2619 = vmatprep.subr.msk.bf16.mxu0 %vm661_vm2, %v809_v49 }
 0x2c1   :  { %2499 = vmatpush3.bf16.xpose.msra.mxu0 %v840_v50 }
 0x2c2   :  { %2620 = vmatprep.subr.msk.bf16.mxu0 %vm661_vm2, %v807_v37 }
 0x2c9   :  { %2501 = vmatpush3.bf16.xpose.msra.mxu0 %v837_v51  ;;  %v796_v51 = vld [vmem:[%s3862_s3 + $0x40] sm:$0xff] }
 0x2d0   :  { %2503 = vmatmul.mubr.msk.bf16.vlgmr.msra.gmra.mxu0 %vm661_vm2, %v774_v47  ;;  %v3172_v47 = vrot.slane %v787_v54, %v938_v38 }
 0x2d1   :  { %2506 = vmatprep.mubr.msk.bf16.mxu0 %vm661_vm2, %v775_v4 }
 0x2d8   :  { %2507 = vmatmul.mubr.msk.bf16.gmra.mxu0 %vm661_vm2, %v776_v61 }
 0x2d9   :  { %2510 = vmatprep.mubr.msk.bf16.mxu0 %vm661_vm2, %v777_v23 }
 0x2e0   :  { %2511 = vmatmul.mubr.msk.bf16.gmra.mxu0 %vm661_vm2, %v778_v18 }
 0x390   :  { %v2504_v55 = vpop.f32.mrf.mxu0 }
 0x391   :  { %v897_v57 = vadd.f32 %v2504_v55, %v790_v40  ;;  %v799_v40 = vld [vmem:[%s3862_s3 + $0x58] sm:$0xff] }
 0x392   :  { %v888_v1 = vpop.f32.mrf.mxu0 }
 0x393   :  { %v889_v59 = vadd.f32 %v888_v1, %v788_v56  ;;  %v3181_v61 = vadd.f32 %v3172_v47, %v897_v57 }
 0x394   :  { %v2505_v62 = vpop.f32.mrf.mxu0 }
 0x395   :  { %v900_v4 = vadd.f32 %v2505_v62, %v791_v58  ;;  %v960_v5 = vsel %vm953_vm12, %v3181_v61, -inf  ;;  %v3189_v8 = vadd.f32 %v3172_v47, %v889_v59  ;;  %v797_v58 = vld [vmem:[%s3862_s3 + $0x48] sm:$0xff] }
 0x396   :  { %961 = vmax.xlane.f32.xlu0 %v960_v5  ;;  %v891_v9 = vpop.f32.mrf.mxu0 }
 0x397   :  { %v892_v12 = vadd.f32 %v891_v9, %v789_v63  ;;  %v954_v16 = vsel %vm953_vm12, %v3189_v8, -inf  ;;  %v3203_v18 = vadd.f32 %v3172_v47, %v900_v4 }
 0x398   :  { %v2508_v13 = vpop.f32.mrf.mxu0 }
 0x399   :  { %v913_v15 = vadd.f32 %v2508_v13, %v794_v10  ;;  %v3200_v17 = vadd.f32 %v3172_v47, %v892_v12  ;;  %v963_v36 = vsel %vm953_vm12, %v3203_v18, -inf }
 0x39a   :  { %v904_v19 = vpop.f32.mrf.mxu0  ;;  %955 = vmax.xlane.f32.xlu0 %v954_v16 }
 0x39b   :  { %v905_v23 = vadd.f32 %v904_v19, %v792_v14  ;;  %v957_v25 = vsel %vm953_vm12, %v3200_v17, -inf  ;;  %v3211_v28 = vadd.f32 %v3172_v47, %v913_v15 }
 0x39c   :  { %v2509_v33 = vpop.f32.mrf.mxu0  ;;  %958 = vmax.xlane.f32.xlu1 %v957_v25 }
 0x39d   :  { %v916_v35 = vadd.f32 %v2509_v33, %v795_v20  ;;  %v972_v46 = vsel %vm953_vm12, %v3211_v28, -inf  ;;  %v945_v49 = vadd.f32 %v3172_v47, %v905_v23 }
 0x39e   :  { %v907_v37 = vpop.f32.mrf.mxu0  ;;  %964 = vmax.xlane.f32.xlu0 %v963_v36 }
 0x39f   :  { %v908_v45 = vadd.f32 %v907_v37, %v793_v34  ;;  %v3224_v48 = vadd.f32 %v3172_v47, %v916_v35  ;;  %v966_v56 = vsel %vm953_vm12, %v945_v49, -inf }
 0x3a0   :  { %973 = vmax.xlane.f32.xlu1 %v972_v46  ;;  %v2512_v50 = vpop.f32.mrf.mxu0 }
 0x3a1   :  { %v929_v52 = vadd.f32 %v2512_v50, %v798_v41  ;;  %v975_v53 = vsel %vm953_vm12, %v3224_v48, -inf  ;;  %v3233_v54 = vadd.f32 %v3172_v47, %v908_v45 }
 0x3a2   :  { %976 = vmax.xlane.f32.xlu0 %v975_v53  ;;  %v920_v38 = vpop.f32.mrf.mxu0 }
 0x3a3   :  { %v921_v55 = vadd.f32 %v920_v38, %v796_v51  ;;  %v951_v57 = vadd.f32 %v3172_v47, %v929_v52  ;;  %v969_v62 = vsel %vm953_vm12, %v3233_v54, -inf }
 0x3a4   :  { %967 = vmax.xlane.f32.xlu1 %v966_v56  ;;  %v2513_v1 = vpop.f32.mrf.mxu0 }
 0x3a5   :  { %v932_v59 = vadd.f32 %v2513_v1, %v799_v40  ;;  %v984_v5 = vsel %vm953_vm12, %v951_v57, -inf  ;;  %v949_v10 = vadd.f32 %v3172_v47, %v921_v55 }
 0x3a6   :  { %970 = vmax.xlane.f32.xlu0 %v969_v62  ;;  %v923_v63 = vpop.f32.mrf.mxu0 }
 0x3a7   :  { %v924_v4 = vadd.f32 %v923_v63, %v797_v58  ;;  %v952_v9 = vadd.f32 %v3172_v47, %v932_v59  ;;  %v978_v14 = vsel %vm953_vm12, %v949_v10, -inf }
 0x3a8   :  { %985 = vmax.xlane.f32.xlu1 %v984_v5 }
 0x3a9   :  { %v987_v12 = vsel %vm953_vm12, %v952_v9, -inf  ;;  %v3250_v13 = vadd.f32 %v3172_v47, %v924_v4 }
 0x3aa   :  { %988 = vmax.xlane.f32.xlu0 %v987_v12 }
 0x3ab   :  { %v981_v15 = vsel %vm953_vm12, %v3250_v13, -inf }
 0x3ac   :  { %979 = vmax.xlane.f32.xlu1 %v978_v14 }
 0x3ae   :  { %982 = vmax.xlane.f32.xlu0 %v981_v15 }
 0x3bd   :  { %1096 = vrot.lane.b32.xlu1 %v3130_v30, %s2763_s18 }
 0x3c4   :  { %1098 = vrot.lane.b32.xlu0 %v3128_v21, %s2763_s18 }
 0x41f   :  { %v962_v16 = vpop.xlane.xlu0 %961 }
 0x420   :  { %v992_v19 = vsub.f32 %v3181_v61, %v962_v16 }
 0x422   :  { %v1006_v20 = vmul.f32 1.442695, %v992_v19 }
 0x423   :  { %v956_v47 = vpop.xlane.xlu0 %955 }
 0x424   :  { %2629 = vpow2.f32 %v1006_v20  ;;  %v990_v23 = vsub.f32 %v3189_v8, %v956_v47 }
 0x425   :  { %v959_v25 = vpop.xlane.xlu1 %958 }
 0x426   :  { %v1002_v33 = vmul.f32 1.442695, %v990_v23  ;;  %v991_v34 = vsub.f32 %v3200_v17, %v959_v25 }
 0x427   :  { %v965_v35 = vpop.xlane.xlu0 %964 }
 0x428   :  { %2631 = vpow2.f32 %v1002_v33  ;;  %v993_v36 = vsub.f32 %v3203_v18, %v965_v35  ;;  %v1004_v37 = vmul.f32 1.442695, %v991_v34 }
 0x429   :  { %v974_v30 = vpop.xlane.xlu1 %973 }
 0x42a   :  { %v1008_v41 = vmul.f32 1.442695, %v993_v36  ;;  %v996_v21 = vsub.f32 %v3211_v28, %v974_v30 }
 0x42b   :  { %v977_v45 = vpop.xlane.xlu0 %976 }
 0x42c   :  { %2633 = vpow2.f32 %v1008_v41  ;;  %v1014_v46 = vmul.f32 1.442695, %v996_v21  ;;  %v997_v17 = vsub.f32 %v3224_v48, %v977_v45 }
 0x42d   :  { %v968_v61 = vpop.xlane.xlu1 %967  ;;  %2635 = vpow2.f32 %v1004_v37 }
 0x42e   :  { %v994_v50 = vsub.f32 %v945_v49, %v968_v61  ;;  %2637 = vpow2.f32 %v1014_v46  ;;  %v1016_v1 = vmul.f32 1.442695, %v997_v17 }
 0x42f   :  { %v971_v8 = vpop.xlane.xlu0 %970 }
 0x430   :  { %v1010_v52 = vmul.f32 1.442695, %v994_v50  ;;  %v995_v58 = vsub.f32 %v3233_v54, %v971_v8 }
 0x431   :  { %v3264_v51 = vpop.eup %2629  ;;  %v986_v53 = vpop.xlane.xlu1 %985 }
 0x432   :  { %v1000_v18 = vsub.f32 %v951_v57, %v986_v53  ;;  %v1032_v38 = vsel %vm953_vm12, %v3264_v51, 0.0  ;;  %2639 = vpow2.f32 %v1010_v52  ;;  %v1012_v5 = vmul.f32 1.442695, %v995_v58 }
 0x433   :  { %v989_v40 = vpop.xlane.xlu0 %988  ;;  %1033 = vadd.xlane.f32.xlu1 %v1032_v38 }
 0x434   :  { %v1022_v28 = vmul.f32 1.442695, %v1000_v18  ;;  %v1001_v55 = vsub.f32 %v952_v9, %v989_v40 }
 0x435   :  { %v3269_v56 = vpop.eup %2631  ;;  %v980_v49 = vpop.xlane.xlu1 %979 }
 0x436   :  { %2641 = vpow2.f32 %v1022_v28  ;;  %v998_v48 = vsub.f32 %v949_v10, %v980_v49  ;;  %v1026_v59 = vsel %vm953_vm12, %v3269_v56, 0.0  ;;  %v1024_v62 = vmul.f32 1.442695, %v1001_v55 }
 0x437   :  { %v983_v57 = vpop.xlane.xlu0 %982  ;;  %1027 = vadd.xlane.f32.xlu1 %v1026_v59  ;;  %2643 = vpow2.f32 %v1016_v1 }
 0x438   :  { %v1018_v63 = vmul.f32 1.442695, %v998_v48  ;;  %v999_v9 = vsub.f32 %v3250_v13, %v983_v57 }
 0x439   :  { %v3274_v4 = vpop.eup %2633  ;;  %v1097_v14 = vpop.permute.xlu1 %1096 }
 0x43a   :  { %2645 = vpow2.f32 %v1018_v63  ;;  %v1035_v12 = vsel %vm953_vm12, %v3274_v4, 0.0  ;;  %v2636_v54 = vpop.eup %2635  ;;  %v1020_v15 = vmul.f32 1.442695, %v999_v9 }
 0x43b   :  { %1036 = vadd.xlane.f32.xlu0 %v1035_v12  ;;  %v1099_v10 = vpop.permute.xlu0 %1098  ;;  %2647 = vpow2.f32 %v1024_v62  ;;  %v1029_v16 = vsel %vm953_vm12, %v2636_v54, 0.0  ;;  %v3280_v19 = vpop.eup %2637  ;;  %v1211_v62 = vld [vmem:[%s3860_s5 + $0x30] sm:$0xff] }
 0x43c   :  { %2518 = vmatprep.subr.bf16.mxu1 %v1099_v10  ;;  %2649 = vpow2.f32 %v1012_v5  ;;  %v1044_v20 = vsel %vm953_vm12, %v3280_v19, 0.0 }
 0x43d   :  { %2519 = vmatpush3.bf16.msra.mxu1 %v1099_v10  ;;  %2651 = vpow2.f32 %v1020_v15  ;;  %v1209_v10 = vld [vmem:[%s3860_s5 + $0x20] sm:$0xff] }
 0x43e   :  { %2520 = vmatprep.subr.bf16.mxu1 %v1097_v14 }
 0x43f   :  { %1030 = vadd.xlane.f32.xlu0 %v1029_v16  ;;  %v3282_v13 = vpop.eup %2639 }
 0x440   :  { %v1038_v33 = vsel %vm953_vm12, %v3282_v13, 0.0 }
 0x441   :  { %2521 = vmatpush3.bf16.msra.mxu1 %v1097_v14  ;;  %v1210_v14 = vld [vmem:[%s3860_s5 + $0x28] sm:$0xff] }
 0x443   :  { %v3286_v47 = vpop.eup %2641  ;;  %1045 = vadd.xlane.f32.xlu0 %v1044_v20 }
 0x444   :  { %v1056_v23 = vsel %vm953_vm12, %v3286_v47, 0.0  ;;  %v3290_v25 = vpop.eup %2643 }
 0x445   :  { %1057 = vadd.xlane.f32.xlu1 %v1056_v23  ;;  %v1047_v30 = vsel %vm953_vm12, %v3290_v25, 0.0 }
 0x447   :  { %v3294_v34 = vpop.eup %2645  ;;  %1039 = vadd.xlane.f32.xlu0 %v1038_v33  ;;  %v1213_v33 = vpack.c.bf16 %v1210_v14, %v1209_v10 }
 0x448   :  { %v1050_v35 = vsel %vm953_vm12, %v3294_v34, 0.0  ;;  %v3298_v36 = vpop.eup %2647 }
 0x449   :  { %1051 = vadd.xlane.f32.xlu1 %v1050_v35  ;;  %v2650_v37 = vpop.eup %2649  ;;  %v1059_v41 = vsel %vm953_vm12, %v3298_v36, 0.0 }
 0x44a   :  { %v1041_v21 = vsel %vm953_vm12, %v2650_v37, 0.0  ;;  %v3305_v45 = vpop.eup %2651 }
 0x44b   :  { %1048 = vadd.xlane.f32.xlu0 %v1047_v30  ;;  %v1053_v61 = vsel %vm953_vm12, %v3305_v45, 0.0 }
 0x44d   :  { %1060 = vadd.xlane.f32.xlu1 %v1059_v41 }
 0x44f   :  { %1042 = vadd.xlane.f32.xlu0 %v1041_v21 }
 0x453   :  { %1054 = vadd.xlane.f32.xlu0 %v1053_v61 }
 0x45e   :  { %1092 = vrot.lane.b32.xlu1 %v3136_v32, %s2763_s18 }
 0x469   :  { %1094 = vrot.lane.b32.xlu0 %v3133_v31, %s2763_s18 }
 0x4bc   :  { %v1034_v46 = vpop.xlane.xlu1 %1033 }
 0x4c0   :  { %v1028_v50 = vpop.xlane.xlu1 %1027 }
 0x4c1   :  { %2653 = vrcp.f32 %v1028_v50 }
 0x4c4   :  { %v1037_v8 = vpop.xlane.xlu0 %1036 }
 0x4c8   :  { %v1031_v17 = vpop.xlane.xlu0 %1030 }
 0x4c9   :  { %2655 = vrcp.f32 %v1031_v17 }
 0x4ca   :  { %2657 = vrcp.f32 %v1037_v8 }
 0x4cb   :  { %2659 = vrcp.f32 %v1034_v46 }
 0x4cc   :  { %v1046_v52 = vpop.xlane.xlu0 %1045 }
 0x4ce   :  { %v1058_v53 = vpop.xlane.xlu1 %1057  ;;  %v2654_v38 = vpop.eup %2653 }
 0x4cf   :  { %v1074_v32 = vmul.f32 %v2654_v38, %v3269_v56  ;;  %v1212_v56 = vld [vmem:[%s3860_s5 + $0x38] sm:$0xff] }
 0x4d0   :  { %v1040_v18 = vpop.xlane.xlu0 %1039  ;;  %v1214_v12 = vpack.c.bf16 %v1212_v56, %v1211_v62  ;;  %v2313_v56 = vld [vmem:[%s3860_s5 + $0xcb] ss:$0 sm:$0xff] }
 0x4d1   :  { %2661 = vrcp.f32 %v1040_v18 }
 0x4d2   :  { %v1052_v55 = vpop.xlane.xlu1 %1051 }
 0x4d4   :  { %v1049_v40 = vpop.xlane.xlu0 %1048 }
 0x4d6   :  { %v2656_v28 = vpop.eup %2655  ;;  %v1061_v58 = vpop.xlane.xlu1 %1060 }
 0x4d7   :  { %v1075_v1 = vmul.f32 %v2656_v28, %v2636_v54  ;;  %v2658_v59 = vpop.eup %2657 }
 0x4d8   :  { %v1043_v31 = vpop.xlane.xlu0 %1042  ;;  %v2660_v63 = vpop.eup %2659  ;;  %v1077_v9 = vmul.f32 %v2658_v59, %v3274_v4 }
 0x4d9   :  { %2663 = vrcp.f32 %v1043_v31  ;;  %v1086_v49 = vpack.c.bf16 %v1075_v1, %v1074_v32  ;;  %v1076_v15 = vmul.f32 %v2660_v63, %v3264_v51 }
 0x4da   :  { %2665 = vrcp.f32 %v1049_v40  ;;  %v1093_v5 = vpop.permute.xlu1 %1092 }
 0x4db   :  { %2526 = vmatprep.mubr.msk.bf16.mxu1 %vm953_vm12, %v1086_v49  ;;  %2667 = vrcp.f32 %v1046_v52  ;;  %v1087_v20 = vpack.c.bf16 %v1077_v9, %v1076_v15 }
 0x4dc   :  { %v1055_v48 = vpop.xlane.xlu0 %1054 }
 0x4dd   :  { %2669 = vrcp.f32 %v1055_v48 }
 0x4de   :  { %2671 = vrcp.f32 %v1052_v55  ;;  %v2662_v54 = vpop.eup %2661 }
 0x4df   :  { %2673 = vrcp.f32 %v1061_v58  ;;  %v1078_v4 = vmul.f32 %v2662_v54, %v3282_v13 }
 0x4e0   :  { %v1095_v57 = vpop.permute.xlu0 %1094  ;;  %2675 = vrcp.f32 %v1058_v53 }
 0x4e1   :  { %2522 = vmatprep.subr.bf16.mxu1 %v1095_v57 }
 0x4e2   :  { %2523 = vmatpush3.bf16.msra.mxu1 %v1095_v57 }
 0x4e3   :  { %2524 = vmatprep.subr.bf16.mxu1 %v1093_v5 }
 0x4e6   :  { %v2664_v16 = vpop.eup %2663  ;;  %2525 = vmatpush3.bf16.msra.mxu1 %v1093_v5 }
 0x4e7   :  { %v1079_v23 = vmul.f32 %v2664_v16, %v2650_v37  ;;  %2538 = vmatprep.subr.bf16.mxu1 %v1214_v12  ;;  %v2666_v35 = vpop.eup %2665 }
 0x4e8   :  { %v2668_v30 = vpop.eup %2667  ;;  %v1081_v51 = vmul.f32 %v2666_v35, %v3290_v25 }
 0x4e9   :  { %2527 = vmatmul.mubr.msk.bf16.vlgmr.msra.gmra.mxu1 %vm953_vm12, %v1087_v20  ;;  %v1088_v41 = vpack.c.bf16 %v1079_v23, %v1078_v4  ;;  %v1080_v13 = vmul.f32 %v2668_v30, %v3280_v19 }
 0x4ea   :  { %v2670_v21 = vpop.eup %2669  ;;  %2539 = vmatpush3.bf16.msra.mxu1 %v1214_v12 }
 0x4eb   :  { %v2672_v61 = vpop.eup %2671  ;;  %2530 = vmatprep.mubr.msk.bf16.mxu1 %vm953_vm12, %v1088_v41  ;;  %2540 = vmatprep.subr.bf16.mxu1 %v1213_v33  ;;  %v1083_v46 = vmul.f32 %v2670_v21, %v3305_v45  ;;  %v1089_v50 = vpack.c.bf16 %v1081_v51, %v1080_v13 }
 0x4ec   :  { %v1082_v37 = vmul.f32 %v2672_v61, %v3294_v34  ;;  %v2674_v8 = vpop.eup %2673 }
 0x4ed   :  { %v2676_v52 = vpop.eup %2675  ;;  %v1085_v53 = vmul.f32 %v2674_v8, %v3298_v36 }
 0x4ee   :  { %2541 = vmatpush3.bf16.msra.mxu1 %v1213_v33  ;;  %v1090_v17 = vpack.c.bf16 %v1083_v46, %v1082_v37  ;;  %v1084_v25 = vmul.f32 %v2676_v52, %v3286_v47 }
 0x4f0   :  { %v1091_v18 = vpack.c.bf16 %v1085_v53, %v1084_v25 }
 0x4f1   :  { %2531 = vmatmul.mubr.msk.bf16.gmra.mxu1 %vm953_vm12, %v1089_v50 }
 0x4f2   :  { %2534 = vmatprep.mubr.msk.bf16.mxu1 %vm953_vm12, %v1090_v17 }
 0x4f9   :  { %2535 = vmatmul.mubr.msk.bf16.gmra.mxu1 %vm953_vm12, %v1091_v18 }
 0x5a9   :  { %v2528_v45 = vpop.f32.mrf.mxu1 }
 0x5ab   :  { %v1162_v19 = vpop.f32.mrf.mxu1 }
 0x5ad   :  { %v2529_v38 = vpop.f32.mrf.mxu1 }
 0x5ae   :  { %v1217_v28 = vpack.c.bf16 %v2529_v38, %v2528_v45 }
 0x5af   :  { %v1165_v34 = vpop.f32.mrf.mxu1 }
 0x5b0   :  { %v1216_v40 = vpack.c.bf16 %v1165_v34, %v1162_v19 }
 0x5b1   :  { %v2532_v55 = vpop.f32.mrf.mxu1 }
 0x5b2   :  { %2542 = vmatprep.mubr.msk.bf16.mxu1 %vm661_vm2, %v1216_v40 }
 0x5b3   :  { %v1178_v32 = vpop.f32.mrf.mxu1  ;;  %2543 = vmatmul.mubr.msk.bf16.vlgmr.msra.gmra.mxu1 %vm661_vm2, %v1217_v28 }
 0x5b5   :  { %v2533_v1 = vpop.f32.mrf.mxu1 }
 0x5b6   :  { %v1219_v49 = vpack.c.bf16 %v2533_v1, %v2532_v55 }
 0x5b7   :  { %v1181_v31 = vpop.f32.mrf.mxu1 }
 0x5b8   :  { %v1218_v36 = vpack.c.bf16 %v1181_v31, %v1178_v32 }
 0x5b9   :  { %v2536_v47 = vpop.f32.mrf.mxu1 }
 0x5ba   :  { %2546 = vmatprep.mubr.msk.bf16.mxu1 %vm661_vm2, %v1218_v36 }
 0x5bb   :  { %v1194_v58 = vpop.f32.mrf.mxu1  ;;  %2547 = vmatmul.mubr.msk.bf16.gmra.mxu1 %vm661_vm2, %v1219_v49 }
 0x5bd   :  { %v2537_v48 = vpop.f32.mrf.mxu1 }
 0x5be   :  { %v1221_v62 = vpack.c.bf16 %v2537_v48, %v2536_v47 }
 0x5bf   :  { %v1197_v59 = vpop.f32.mrf.mxu1 }
 0x5c0   :  { %v1220_v57 = vpack.c.bf16 %v1197_v59, %v1194_v58 }
 0x5c2   :  { %2550 = vmatprep.mubr.msk.bf16.mxu1 %vm661_vm2, %v1220_v57 }
 0x5c3   :  { %2551 = vmatmul.mubr.msk.bf16.gmra.mxu1 %vm661_vm2, %v1221_v62 }
 0x673   :  { %v2544_v63 = vpop.f32.mrf.mxu1 }
 0x674   :  { %v1287_v5 = vadd.f32 %v2544_v63, %v2313_v56 }
 0x675   :  { %v1278_v9 = vpop.f32.mrf.mxu1 }
 0x676   :  { %v1279_v12 = vadd.f32 %v2313_v56, %v1278_v9  ;;  %v1329_v15 = vadd.f32 %v1287_v5, %v3054_v44 }
 0x677   :  { %v2545_v54 = vpop.f32.mrf.mxu1 }
 0x678   :  { %v1327_v10 = vadd.f32 %v1279_v12, %v3050_v42  ;;  %v1290_v16 = vadd.f32 %v2545_v54, %v2313_v56  ;;  %v1345_v30 = vsel %vm661_vm2, %v1329_v15, 0.0 }
 0x679   :  { %v1281_v14 = vpop.f32.mrf.mxu1 }
 0x67a   :  { %v1282_v20 = vadd.f32 %v2313_v56, %v1281_v14  ;;  %v1339_v4 = vsel %vm661_vm2, %v1327_v10, 0.0  ;;  %v1330_v42 = vadd.f32 %v1290_v16, %v3046_v39 }
 0x67b   :  { %v2548_v23 = vpop.f32.mrf.mxu1  ;;  %1340 = vadd.xlane.f32.xlu1 %v1339_v4 }
 0x67c   :  { %v1328_v33 = vadd.f32 %v1282_v20, %v3052_v43  ;;  %v1303_v41 = vadd.f32 %v2548_v23, %v2313_v56  ;;  %v1348_v50 = vsel %vm661_vm2, %v1330_v42, 0.0 }
 0x67d   :  { %v1294_v35 = vpop.f32.mrf.mxu1 }
 0x67e   :  { %v1295_v21 = vadd.f32 %v2313_v56, %v1294_v35  ;;  %v1342_v61 = vsel %vm661_vm2, %v1328_v33, 0.0  ;;  %v1333_v8 = vadd.f32 %v1303_v41, %v3076_v3 }
 0x67f   :  { %v2549_v51 = vpop.f32.mrf.mxu1  ;;  %1343 = vadd.xlane.f32.xlu0 %v1342_v61  ;;  %1346 = vadd.xlane.f32.xlu1 %v1345_v30 }
 0x680   :  { %v1331_v44 = vadd.f32 %v1295_v21, %v3072_v0  ;;  %v1306_v46 = vadd.f32 %v2549_v51, %v2313_v56  ;;  %v1357_v45 = vsel %vm661_vm2, %v1333_v8, 0.0 }
 0x681   :  { %v1297_v13 = vpop.f32.mrf.mxu1 }
 0x682   :  { %v1298_v37 = vadd.f32 %v2313_v56, %v1297_v13  ;;  %v1351_v43 = vsel %vm661_vm2, %v1331_v44, 0.0  ;;  %v3363_v53 = vadd.f32 %v1306_v46, %v3068_v60 }
 0x683   :  { %1349 = vadd.xlane.f32.xlu0 %v1348_v50  ;;  %1352 = vadd.xlane.f32.xlu1 %v1351_v43  ;;  %v2552_v17 = vpop.f32.mrf.mxu1 }
 0x684   :  { %v1332_v52 = vadd.f32 %v1298_v37, %v3074_v2  ;;  %v1319_v25 = vadd.f32 %v2552_v17, %v2313_v56  ;;  %v1360_v34 = vsel %vm661_vm2, %v3363_v53, 0.0 }
 0x685   :  { %v1310_v39 = vpop.f32.mrf.mxu1 }
 0x686   :  { %v1311_v0 = vadd.f32 %v2313_v56, %v1310_v39  ;;  %v1354_v18 = vsel %vm661_vm2, %v1332_v52, 0.0  ;;  %v3372_v28 = vadd.f32 %v1319_v25, %v3098_v27 }
 0x687   :  { %1355 = vadd.xlane.f32.xlu0 %v1354_v18  ;;  %1358 = vadd.xlane.f32.xlu1 %v1357_v45  ;;  %v2553_v19 = vpop.f32.mrf.mxu1 }
 0x688   :  { %v1335_v3 = vadd.f32 %v1311_v0, %v3094_v24  ;;  %v1322_v2 = vadd.f32 %v2553_v19, %v2313_v56  ;;  %v1369_v24 = vsel %vm661_vm2, %v3372_v28, 0.0 }
 0x689   :  { %v1313_v38 = vpop.f32.mrf.mxu1 }
 0x68a   :  { %v1314_v40 = vadd.f32 %v2313_v56, %v1313_v38  ;;  %v1363_v60 = vsel %vm661_vm2, %v1335_v3, 0.0  ;;  %v3379_v1 = vadd.f32 %v1322_v2, %v3090_v22 }
 0x68b   :  { %1361 = vadd.xlane.f32.xlu0 %v1360_v34  ;;  %1364 = vadd.xlane.f32.xlu1 %v1363_v60 }
 0x68c   :  { %v1336_v55 = vadd.f32 %v1314_v40, %v3096_v26  ;;  %v1372_v31 = vsel %vm661_vm2, %v3379_v1, 0.0 }
 0x68e   :  { %v1366_v32 = vsel %vm661_vm2, %v1336_v55, 0.0 }
 0x68f   :  { %1367 = vadd.xlane.f32.xlu0 %v1366_v32  ;;  %1370 = vadd.xlane.f32.xlu1 %v1369_v24 }
 0x693   :  { %1373 = vadd.xlane.f32.xlu0 %v1372_v31 }
 0x704   :  { %v1341_v27 = vpop.xlane.xlu1 %1340 }
 0x705   :  { %v1376_v36 = vmul.f32 0.03125, %v1341_v27 }
 0x707   :  { %v3383_v49 = vsub.f32 %v1327_v10, %v1376_v36  ;;  %v1530_v36 = vld [vmem:[%s3860_s5 + $0x70] sm:$0xff] }
 0x708   :  { %v1344_v47 = vpop.xlane.xlu0 %1343  ;;  %v1347_v26 = vpop.xlane.xlu1 %1346 }
 0x709   :  { %v1377_v58 = vmul.f32 0.03125, %v1344_v47  ;;  %v1378_v48 = vmul.f32 0.03125, %v1347_v26  ;;  %v1400_v59 = vmul.f32 %v3383_v49, %v3383_v49  ;;  %v1528_v26 = vld [vmem:[%s3860_s5 + $0x60] sm:$0xff] }
 0x70b   :  { %v3387_v57 = vsub.f32 %v1328_v33, %v1377_v58  ;;  %v3389_v22 = vsub.f32 %v1329_v15, %v1378_v48  ;;  %v1412_v62 = vsel %vm661_vm2, %v1400_v59, 0.0  ;;  %v1529_v58 = vld [vmem:[%s3860_s5 + $0x68] sm:$0xff] }
 0x70c   :  { %v1350_v56 = vpop.xlane.xlu0 %1349  ;;  %v1353_v63 = vpop.xlane.xlu1 %1352  ;;  %1413 = vadd.xlane.f32.xlu1 %v1412_v62  ;;  %v1532_v48 = vpack.c.bf16 %v1529_v58, %v1528_v26 }
 0x70d   :  { %v1379_v5 = vmul.f32 0.03125, %v1350_v56  ;;  %v1380_v9 = vmul.f32 0.03125, %v1353_v63  ;;  %v1401_v12 = vmul.f32 %v3387_v57, %v3387_v57  ;;  %v1402_v54 = vmul.f32 %v3389_v22, %v3389_v22 }
 0x70f   :  { %v3396_v10 = vsub.f32 %v1330_v42, %v1379_v5  ;;  %v3398_v14 = vsub.f32 %v1331_v44, %v1380_v9  ;;  %v1415_v15 = vsel %vm661_vm2, %v1401_v12, 0.0  ;;  %v1418_v16 = vsel %vm661_vm2, %v1402_v54, 0.0 }
 0x710   :  { %v1356_v20 = vpop.xlane.xlu0 %1355  ;;  %v1359_v4 = vpop.xlane.xlu1 %1358  ;;  %1416 = vadd.xlane.f32.xlu0 %v1415_v15  ;;  %1419 = vadd.xlane.f32.xlu1 %v1418_v16 }
 0x711   :  { %v1381_v23 = vmul.f32 0.03125, %v1356_v20  ;;  %v1382_v33 = vmul.f32 0.03125, %v1359_v4  ;;  %v1403_v35 = vmul.f32 %v3396_v10, %v3396_v10  ;;  %v1404_v30 = vmul.f32 %v3398_v14, %v3398_v14 }
 0x713   :  { %v3406_v41 = vsub.f32 %v1332_v52, %v1381_v23  ;;  %v3408_v21 = vsub.f32 %v1333_v8, %v1382_v33  ;;  %v1421_v61 = vsel %vm661_vm2, %v1403_v35, 0.0  ;;  %v1424_v42 = vsel %vm661_vm2, %v1404_v30, 0.0 }
 0x714   :  { %v1362_v51 = vpop.xlane.xlu0 %1361  ;;  %1422 = vadd.xlane.f32.xlu0 %v1421_v61  ;;  %1425 = vadd.xlane.f32.xlu1 %v1424_v42  ;;  %v1365_v44 = vpop.xlane.xlu1 %1364 }
 0x715   :  { %v1383_v46 = vmul.f32 0.03125, %v1362_v51  ;;  %v1384_v13 = vmul.f32 0.03125, %v1365_v44  ;;  %v1405_v37 = vmul.f32 %v3406_v41, %v3406_v41  ;;  %v1406_v50 = vmul.f32 %v3408_v21, %v3408_v21 }
 0x717   :  { %v3417_v43 = vsub.f32 %v3363_v53, %v1383_v46  ;;  %v3419_v8 = vsub.f32 %v1335_v3, %v1384_v13  ;;  %v1427_v17 = vsel %vm661_vm2, %v1405_v37, 0.0  ;;  %v1430_v52 = vsel %vm661_vm2, %v1406_v50, 0.0 }
 0x718   :  { %1428 = vadd.xlane.f32.xlu0 %v1427_v17  ;;  %v1368_v39 = vpop.xlane.xlu0 %1367  ;;  %1431 = vadd.xlane.f32.xlu1 %v1430_v52  ;;  %v1371_v25 = vpop.xlane.xlu1 %1370 }
 0x719   :  { %v1385_v0 = vmul.f32 0.03125, %v1368_v39  ;;  %v1386_v18 = vmul.f32 0.03125, %v1371_v25  ;;  %v1407_v45 = vmul.f32 %v3417_v43, %v3417_v43  ;;  %v1408_v19 = vmul.f32 %v3419_v8, %v3419_v8  ;;  %v3462_v39 = vld [vmem:[%s3860_s5 + $0xcf] ss:$0 sm:$0xff] }
 0x71b   :  { %v3427_v53 = vsub.f32 %v1336_v55, %v1385_v0  ;;  %v3430_v3 = vsub.f32 %v3372_v28, %v1386_v18  ;;  %v1433_v38 = vsel %vm661_vm2, %v1407_v45, 0.0  ;;  %v1436_v34 = vsel %vm661_vm2, %v1408_v19, 0.0 }
 0x71c   :  { %1434 = vadd.xlane.f32.xlu0 %v1433_v38  ;;  %v1374_v2 = vpop.xlane.xlu0 %1373  ;;  %1437 = vadd.xlane.f32.xlu1 %v1436_v34 }
 0x71d   :  { %v1387_v40 = vmul.f32 0.03125, %v1374_v2  ;;  %v1409_v60 = vmul.f32 %v3427_v53, %v3427_v53  ;;  %v1410_v32 = vmul.f32 %v3430_v3, %v3430_v3 }
 0x71f   :  { %v3439_v55 = vsub.f32 %v3379_v1, %v1387_v40  ;;  %v1439_v28 = vsel %vm661_vm2, %v1409_v60, 0.0  ;;  %v1442_v24 = vsel %vm661_vm2, %v1410_v32, 0.0  ;;  %v1531_v1 = vld [vmem:[%s3860_s5 + $0x78] sm:$0xff] }
 0x720   :  { %1440 = vadd.xlane.f32.xlu0 %v1439_v28  ;;  %1443 = vadd.xlane.f32.xlu1 %v1442_v24  ;;  %v1533_v47 = vpack.c.bf16 %v1531_v1, %v1530_v36  ;;  %v2321_v24 = vld [vmem:[%s3860_s5 + $0xd0] ss:$0 sm:$0xff] }
 0x721   :  { %v1411_v31 = vmul.f32 %v3439_v55, %v3439_v55 }
 0x722   :  { %2554 = vmatprep.subr.bf16.mxu0 %v1533_v47 }
 0x723   :  { %v1445_v27 = vsel %vm661_vm2, %v1411_v31, 0.0  ;;  %2555 = vmatpush3.bf16.msra.mxu0 %v1533_v47 }
 0x724   :  { %1446 = vadd.xlane.f32.xlu0 %v1445_v27  ;;  %2556 = vmatprep.subr.bf16.mxu0 %v1532_v48 }
 0x727   :  { %2557 = vmatpush3.bf16.msra.mxu0 %v1532_v48 }
 0x728   :  { %2590 = vmatprep.subr.bf16.mxu0 %v2760_v29 }
 0x795   :  { %v1414_v59 = vpop.xlane.xlu1 %1413 }
 0x796   :  { %v1448_v62 = vmul.f32 0.03125, %v1414_v59 }
 0x798   :  { %v1460_v56 = vadd.f32 1e-12, %v1448_v62 }
 0x799   :  { %v1417_v63 = vpop.xlane.xlu0 %1416  ;;  %v1420_v5 = vpop.xlane.xlu1 %1419 }
 0x79a   :  { %2677 = vrsqrt.f32 %v1460_v56  ;;  %v1449_v9 = vmul.f32 0.03125, %v1417_v63  ;;  %v1450_v12 = vmul.f32 0.03125, %v1420_v5 }
 0x79c   :  { %v1461_v54 = vadd.f32 1e-12, %v1449_v9  ;;  %v1462_v15 = vadd.f32 1e-12, %v1450_v12 }
 0x79d   :  { %v1423_v16 = vpop.xlane.xlu0 %1422  ;;  %v1426_v20 = vpop.xlane.xlu1 %1425 }
 0x79e   :  { %2679 = vrsqrt.f32 %v1461_v54  ;;  %v1451_v4 = vmul.f32 0.03125, %v1423_v16  ;;  %v1452_v23 = vmul.f32 0.03125, %v1426_v20 }
 0x79f   :  { %2681 = vrsqrt.f32 %v1462_v15 }
 0x7a0   :  { %v1463_v33 = vadd.f32 1e-12, %v1451_v4  ;;  %v1464_v35 = vadd.f32 1e-12, %v1452_v23 }
 0x7a1   :  { %v1429_v30 = vpop.xlane.xlu0 %1428  ;;  %v1432_v61 = vpop.xlane.xlu1 %1431 }
 0x7a2   :  { %2683 = vrsqrt.f32 %v1463_v33  ;;  %v1453_v42 = vmul.f32 0.03125, %v1429_v30  ;;  %v1454_v51 = vmul.f32 0.03125, %v1432_v61 }
 0x7a3   :  { %2685 = vrsqrt.f32 %v1464_v35 }
 0x7a4   :  { %v1465_v44 = vadd.f32 1e-12, %v1453_v42  ;;  %v1466_v46 = vadd.f32 1e-12, %v1454_v51 }
 0x7a5   :  { %v1435_v13 = vpop.xlane.xlu0 %1434  ;;  %v1438_v37 = vpop.xlane.xlu1 %1437 }
 0x7a6   :  { %2687 = vrsqrt.f32 %v1465_v44  ;;  %v1455_v50 = vmul.f32 0.03125, %v1435_v13  ;;  %v1456_v17 = vmul.f32 0.03125, %v1438_v37 }
 0x7a7   :  { %v2678_v52 = vpop.eup %2677  ;;  %2689 = vrsqrt.f32 %v1466_v46 }
 0x7a8   :  { %v1467_v25 = vadd.f32 1e-12, %v1455_v50  ;;  %v1468_v0 = vadd.f32 1e-12, %v1456_v17  ;;  %v1484_v18 = vmul.f32 %v2678_v52, %v3383_v49 }
 0x7a9   :  { %v1441_v45 = vpop.xlane.xlu0 %1440  ;;  %v1444_v19 = vpop.xlane.xlu1 %1443 }
 0x7aa   :  { %2691 = vrsqrt.f32 %v1467_v25  ;;  %v1457_v38 = vmul.f32 0.03125, %v1441_v45  ;;  %v1458_v34 = vmul.f32 0.03125, %v1444_v19  ;;  %v1500_v40 = vmul.f32 %v3462_v39, %v1484_v18 }
 0x7ab   :  { %v2680_v2 = vpop.eup %2679  ;;  %2693 = vrsqrt.f32 %v1468_v0 }
 0x7ac   :  { %v2682_v60 = vpop.eup %2681  ;;  %v1469_v32 = vadd.f32 1e-12, %v1457_v38  ;;  %v1470_v28 = vadd.f32 1e-12, %v1458_v34  ;;  %v1485_v31 = vmul.f32 %v2680_v2, %v3387_v57  ;;  %v3472_v26 = vadd.f32 %v2321_v24, %v1500_v40  ;;  %v1759_v2 = vld [vmem:[%s3860_s5 + $0xb8] sm:$0xff]  ;;  %v1756_v40 = vld [vmem:[%s3860_s5 + $0xa0] sm:$0xff] }
 0x7ad   :  { %v1486_v49 = vmul.f32 %v2682_v60, %v3389_v22  ;;  %v1447_v27 = vpop.xlane.xlu0 %1446  ;;  %v1757_v60 = vld [vmem:[%s3860_s5 + $0xa8] sm:$0xff] }
 0x7ae   :  { %2695 = vrsqrt.f32 %v1469_v32  ;;  %v1459_v36 = vmul.f32 0.03125, %v1447_v27  ;;  %v1501_v1 = vmul.f32 %v3462_v39, %v1485_v31  ;;  %v1762_v32 = vpack.c.bf16 %v1757_v60, %v1756_v40  ;;  %v1753_v27 = vld [vmem:[%s3860_s5 + $0x88] sm:$0xff] }
 0x7af   :  { %v2684_v47 = vpop.eup %2683  ;;  %2697 = vrsqrt.f32 %v1470_v28  ;;  %v1502_v48 = vmul.f32 %v3462_v39, %v1486_v49  ;;  %v1754_v28 = vld [vmem:[%s3860_s5 + $0x90] sm:$0xff]  ;;  %v1752_v49 = vld [vmem:[%s3860_s5 + $0x80] sm:$0xff] }
 0x7b0   :  { %v2686_v58 = vpop.eup %2685  ;;  %v1487_v59 = vmul.f32 %v2684_v47, %v3396_v10  ;;  %v1471_v62 = vadd.f32 1e-12, %v1459_v36  ;;  %v3476_v56 = vadd.f32 %v2321_v24, %v1501_v1  ;;  %v1760_v36 = vpack.c.bf16 %v1753_v27, %v1752_v49  ;;  %v3561_v1 = vld [vmem:[%s3860_s5 + $0xcd] ss:$0 sm:$0xff] }
 0x7b1   :  { %v1488_v57 = vmul.f32 %v2686_v58, %v3398_v14  ;;  %v3483_v12 = vadd.f32 %v2321_v24, %v1502_v48 }
 0x7b2   :  { %v1503_v22 = vmul.f32 %v3462_v39, %v1487_v59  ;;  %2699 = vrsqrt.f32 %v1471_v62  ;;  %v1535_v63 = vpack.c.bf16 %v3476_v56, %v3472_v26 }
 0x7b3   :  { %v2688_v5 = vpop.eup %2687  ;;  %v1504_v15 = vmul.f32 %v3462_v39, %v1488_v57 }
 0x7b4   :  { %v2690_v9 = vpop.eup %2689  ;;  %2558 = vmatprep.mubr.msk.bf16.mxu0 %vm661_vm2, %v1535_v63  ;;  %v3485_v54 = vadd.f32 %v2321_v24, %v1503_v22  ;;  %v1489_v10 = vmul.f32 %v2688_v5, %v3406_v41 }
 0x7b5   :  { %v1490_v14 = vmul.f32 %v2690_v9, %v3408_v21  ;;  %v3494_v33 = vadd.f32 %v2321_v24, %v1504_v15 }
 0x7b6   :  { %v1536_v16 = vpack.c.bf16 %v3485_v54, %v3483_v12  ;;  %v1505_v20 = vmul.f32 %v3462_v39, %v1489_v10 }
 0x7b7   :  { %v2692_v4 = vpop.eup %2691  ;;  %v1506_v41 = vmul.f32 %v3462_v39, %v1490_v14 }
 0x7b8   :  { %v2694_v23 = vpop.eup %2693  ;;  %2559 = vmatmul.mubr.msk.bf16.vlgmr.msra.gmra.mxu0 %vm661_vm2, %v1536_v16  ;;  %v3496_v35 = vadd.f32 %v2321_v24, %v1505_v20  ;;  %v1491_v30 = vmul.f32 %v2692_v4, %v3417_v43 }
 0x7b9   :  { %v1492_v61 = vmul.f32 %v2694_v23, %v3419_v8  ;;  %v3505_v46 = vadd.f32 %v2321_v24, %v1506_v41 }
 0x7ba   :  { %v1537_v21 = vpack.c.bf16 %v3496_v35, %v3494_v33  ;;  %v1507_v42 = vmul.f32 %v3462_v39, %v1491_v30 }
 0x7bb   :  { %v2696_v51 = vpop.eup %2695  ;;  %v1508_v43 = vmul.f32 %v3462_v39, %v1492_v61 }
 0x7bc   :  { %v2698_v44 = vpop.eup %2697  ;;  %2562 = vmatprep.mubr.msk.bf16.mxu0 %vm661_vm2, %v1537_v21  ;;  %v3507_v13 = vadd.f32 %v2321_v24, %v1507_v42  ;;  %v1493_v37 = vmul.f32 %v2696_v51, %v3427_v53 }
 0x7bd   :  { %v1494_v50 = vmul.f32 %v2698_v44, %v3430_v3  ;;  %v3516_v25 = vadd.f32 %v2321_v24, %v1508_v43 }
 0x7be   :  { %v1538_v8 = vpack.c.bf16 %v3507_v13, %v3505_v46  ;;  %v1509_v17 = vmul.f32 %v3462_v39, %v1493_v37 }
 0x7bf   :  { %v2700_v52 = vpop.eup %2699  ;;  %v1510_v53 = vmul.f32 %v3462_v39, %v1494_v50 }
 0x7c0   :  { %2563 = vmatmul.mubr.msk.bf16.gmra.mxu0 %vm661_vm2, %v1538_v8  ;;  %v3518_v0 = vadd.f32 %v2321_v24, %v1509_v17  ;;  %v1495_v18 = vmul.f32 %v2700_v52, %v3439_v55  ;;  %v1758_v55 = vld [vmem:[%s3860_s5 + $0xb0] sm:$0xff] }
 0x7c1   :  { %v3526_v19 = vadd.f32 %v2321_v24, %v1510_v53 }
 0x7c2   :  { %v1539_v45 = vpack.c.bf16 %v3518_v0, %v3516_v25  ;;  %v1511_v3 = vmul.f32 %v3462_v39, %v1495_v18  ;;  %v1763_v39 = vpack.c.bf16 %v1759_v2, %v1758_v55 }
 0x7c4   :  { %2566 = vmatprep.mubr.msk.bf16.mxu0 %vm661_vm2, %v1539_v45  ;;  %v3528_v38 = vadd.f32 %v2321_v24, %v1511_v3  ;;  %2570 = vmatprep.subr.bf16.mxu1 %v1763_v39  ;;  %v1755_v24 = vld [vmem:[%s3860_s5 + $0x98] sm:$0xff] }
 0x7c5   :  { %2571 = vmatpush3.bf16.msra.mxu1 %v1763_v39  ;;  %v1761_v31 = vpack.c.bf16 %v1755_v24, %v1754_v28 }
 0x7c6   :  { %v1540_v34 = vpack.c.bf16 %v3528_v38, %v3526_v19  ;;  %2572 = vmatprep.subr.bf16.mxu1 %v1762_v32 }
 0x7c8   :  { %2567 = vmatmul.mubr.msk.bf16.gmra.mxu0 %vm661_vm2, %v1540_v34 }
 0x7c9   :  { %2573 = vmatpush3.bf16.msra.mxu1 %v1762_v32  ;;  %2602 = vmatprep.mubr.msk.bf16.mxu0 %vm2764_vm14, %v2760_v29 }
 0x7ca   :  { %2574 = vmatprep.subr.bf16.mxu1 %v1761_v31 }
 0x7cd   :  { %2575 = vmatpush3.bf16.msra.mxu1 %v1761_v31 }
 0x7ce   :  { %2576 = vmatprep.subr.bf16.mxu1 %v1760_v36 }
 0x7d1   :  { %2577 = vmatpush3.bf16.msra.mxu1 %v1760_v36 }
 0x7d2   :  { %2606 = vmatprep.subr.bf16.mxu1 %v2760_v29 }
 0x878   :  { %v2560_v47 = vpop.f32.mrf.mxu0 }
 0x879   :  { %v3564_v58 = vadd.f32 %v2560_v47, %v3561_v1 }
 0x87a   :  { %v1597_v48 = vpop.f32.mrf.mxu0 }
 0x87b   :  { %v1646_v59 = vmul.f32 %v3564_v58, %v3564_v58  ;;  %v3569_v62 = vadd.f32 %v3561_v1, %v1597_v48 }
 0x87c   :  { %v2561_v57 = vpop.f32.mrf.mxu0 }
 0x87d   :  { %v1658_v22 = vmul.f32 %v1646_v59, %v3564_v58  ;;  %v1644_v63 = vmul.f32 %v3569_v62, %v3569_v62  ;;  %v3575_v5 = vadd.f32 %v2561_v57, %v3561_v1 }
 0x87e   :  { %v1600_v9 = vpop.f32.mrf.mxu0 }
 0x87f   :  { %v1670_v10 = vmul.f32 0.044715, %v1658_v22  ;;  %v1656_v15 = vmul.f32 %v1644_v63, %v3569_v62  ;;  %v1647_v14 = vmul.f32 %v3575_v5, %v3575_v5  ;;  %v3581_v16 = vadd.f32 %v3561_v1, %v1600_v9 }
 0x880   :  { %v2564_v20 = vpop.f32.mrf.mxu0 }
 0x881   :  { %v1682_v4 = vadd.f32 %v1670_v10, %v3564_v58  ;;  %v1668_v23 = vmul.f32 0.044715, %v1656_v15  ;;  %v1659_v30 = vmul.f32 %v1647_v14, %v3575_v5  ;;  %v1645_v41 = vmul.f32 %v3581_v16, %v3581_v16 }
 0x882   :  { %v3588_v61 = vadd.f32 %v2564_v20, %v3561_v1  ;;  %v1613_v21 = vpop.f32.mrf.mxu0 }
 0x883   :  { %v1694_v42 = vmul.f32 0.7978846, %v1682_v4  ;;  %v1680_v51 = vadd.f32 %v1668_v23, %v3569_v62  ;;  %v1671_v44 = vmul.f32 0.044715, %v1659_v30  ;;  %v1657_v37 = vmul.f32 %v1645_v41, %v3581_v16 }
 0x884   :  { %v1650_v43 = vmul.f32 %v3588_v61, %v3588_v61  ;;  %v3595_v50 = vadd.f32 %v3561_v1, %v1613_v21  ;;  %v2565_v8 = vpop.f32.mrf.mxu0 }
 0x885   :  { %v1692_v17 = vmul.f32 0.7978846, %v1680_v51  ;;  %v1683_v52 = vadd.f32 %v1671_v44, %v3575_v5  ;;  %v1669_v18 = vmul.f32 0.044715, %v1657_v37  ;;  %2701 = vtanh.f32 %v1694_v42 }
 0x886   :  { %v1662_v53 = vmul.f32 %v1650_v43, %v3588_v61  ;;  %v1648_v45 = vmul.f32 %v3595_v50, %v3595_v50  ;;  %v3602_v3 = vadd.f32 %v2565_v8, %v3561_v1  ;;  %v1616_v34 = vpop.f32.mrf.mxu0 }
 0x887   :  { %2703 = vtanh.f32 %v1692_v17  ;;  %v1695_v55 = vmul.f32 0.7978846, %v1683_v52  ;;  %v1681_v2 = vadd.f32 %v1669_v18, %v3581_v16  ;;  %v3606_v39 = vadd.f32 %v3561_v1, %v1616_v34 }
 0x888   :  { %v1674_v40 = vmul.f32 0.044715, %v1662_v53  ;;  %v1660_v60 = vmul.f32 %v1648_v45, %v3595_v50  ;;  %v1651_v32 = vmul.f32 %v3602_v3, %v3602_v3  ;;  %v2568_v28 = vpop.f32.mrf.mxu0 }
 0x889   :  { %2705 = vtanh.f32 %v1695_v55  ;;  %v1693_v24 = vmul.f32 0.7978846, %v1681_v2  ;;  %v1649_v31 = vmul.f32 %v3606_v39, %v3606_v39  ;;  %v3614_v49 = vadd.f32 %v2568_v28, %v3561_v1 }
 0x88a   :  { %v1686_v27 = vadd.f32 %v1674_v40, %v3588_v61  ;;  %v1672_v36 = vmul.f32 0.044715, %v1660_v60  ;;  %v1663_v47 = vmul.f32 %v1651_v32, %v3602_v3  ;;  %v1629_v48 = vpop.f32.mrf.mxu0 }
 0x88b   :  { %2707 = vtanh.f32 %v1693_v24  ;;  %v1661_v59 = vmul.f32 %v1649_v31, %v3606_v39  ;;  %v1654_v57 = vmul.f32 %v3614_v49, %v3614_v49  ;;  %v3622_v22 = vadd.f32 %v3561_v1, %v1629_v48 }
 0x88c   :  { %v1698_v63 = vmul.f32 0.7978846, %v1686_v27  ;;  %v1684_v9 = vadd.f32 %v1672_v36, %v3595_v50  ;;  %v1675_v10 = vmul.f32 0.044715, %v1663_v47  ;;  %v2569_v15 = vpop.f32.mrf.mxu0 }
 0x88d   :  { %v1673_v14 = vmul.f32 0.044715, %v1661_v59  ;;  %v1666_v20 = vmul.f32 %v1654_v57, %v3614_v49  ;;  %v1652_v4 = vmul.f32 %v3622_v22, %v3622_v22  ;;  %v3629_v23 = vadd.f32 %v2569_v15, %v3561_v1 }
 0x88e   :  { %2709 = vtanh.f32 %v1698_v63  ;;  %v1696_v30 = vmul.f32 0.7978846, %v1684_v9  ;;  %v1687_v41 = vadd.f32 %v1675_v10, %v3602_v3  ;;  %v1632_v21 = vpop.f32.mrf.mxu0 }
 0x88f   :  { %v1685_v42 = vadd.f32 %v1673_v14, %v3606_v39  ;;  %v1678_v51 = vmul.f32 0.044715, %v1666_v20  ;;  %v1664_v44 = vmul.f32 %v1652_v4, %v3622_v22  ;;  %v1655_v37 = vmul.f32 %v3629_v23, %v3629_v23 }
 0x890   :  { %2711 = vtanh.f32 %v1696_v30  ;;  %v1699_v43 = vmul.f32 0.7978846, %v1687_v41  ;;  %v3637_v8 = vadd.f32 %v3561_v1, %v1632_v21 }
 0x891   :  { %v1697_v17 = vmul.f32 0.7978846, %v1685_v42  ;;  %v1690_v52 = vadd.f32 %v1678_v51, %v3614_v49  ;;  %v1676_v18 = vmul.f32 0.044715, %v1664_v44  ;;  %v1667_v53 = vmul.f32 %v1655_v37, %v3629_v23 }
 0x892   :  { %2713 = vtanh.f32 %v1699_v43  ;;  %v1653_v45 = vmul.f32 %v3637_v8, %v3637_v8  ;;  %v2702_v34 = vpop.eup %2701 }
 0x893   :  { %2715 = vtanh.f32 %v1697_v17  ;;  %v1702_v55 = vmul.f32 0.7978846, %v1690_v52  ;;  %v1688_v2 = vadd.f32 %v1676_v18, %v3622_v22  ;;  %v1679_v60 = vmul.f32 0.044715, %v1667_v53 }
 0x894   :  { %v2704_v40 = vpop.eup %2703  ;;  %v1665_v1 = vmul.f32 %v1653_v45, %v3637_v8  ;;  %v1718_v31 = vadd.f32 1.0, %v2702_v34 }
 0x895   :  { %v1716_v32 = vadd.f32 1.0, %v2704_v40  ;;  %v1700_v28 = vmul.f32 0.7978846, %v1688_v2  ;;  %2717 = vtanh.f32 %v1702_v55  ;;  %v1691_v27 = vadd.f32 %v1679_v60, %v3629_v23 }
 0x896   :  { %v2706_v24 = vpop.eup %2705  ;;  %v1677_v36 = vmul.f32 0.044715, %v1665_v1  ;;  %v1730_v15 = vmul.f32 0.5, %v1718_v31 }
 0x897   :  { %v1719_v47 = vadd.f32 1.0, %v2706_v24  ;;  %2719 = vtanh.f32 %v1700_v28  ;;  %v1703_v59 = vmul.f32 0.7978846, %v1691_v27  ;;  %v1728_v63 = vmul.f32 0.5, %v1716_v32 }
 0x898   :  { %v2708_v48 = vpop.eup %2707  ;;  %v1689_v57 = vadd.f32 %v1677_v36, %v3637_v8  ;;  %v1742_v51 = vmul.f32 %v1730_v15, %v3564_v58 }
 0x899   :  { %v1731_v9 = vmul.f32 0.5, %v1719_v47  ;;  %v1717_v10 = vadd.f32 1.0, %v2708_v48  ;;  %2721 = vtanh.f32 %v1703_v59  ;;  %v1740_v21 = vmul.f32 %v1728_v63, %v3569_v62 }
 0x89a   :  { %v1701_v14 = vmul.f32 0.7978846, %v1689_v57 }
 0x89b   :  { %v2710_v20 = vpop.eup %2709  ;;  %v1729_v4 = vmul.f32 0.5, %v1717_v10  ;;  %v1743_v30 = vmul.f32 %v1731_v9, %v3575_v5 }
 0x89c   :  { %2723 = vtanh.f32 %v1701_v14  ;;  %v1722_v44 = vadd.f32 1.0, %v2710_v20 }
 0x89d   :  { %v2712_v41 = vpop.eup %2711  ;;  %v1741_v42 = vmul.f32 %v1729_v4, %v3581_v16  ;;  %v1766_v18 = vpack.c.bf16 %v1743_v30, %v1742_v51 }
 0x89e   :  { %v1720_v37 = vadd.f32 1.0, %v2712_v41  ;;  %v1734_v5 = vmul.f32 0.5, %v1722_v44 }
 0x89f   :  { %v2714_v43 = vpop.eup %2713  ;;  %v1765_v17 = vpack.c.bf16 %v1741_v42, %v1740_v21 }
 0x8a0   :  { %v2716_v52 = vpop.eup %2715  ;;  %v1723_v53 = vadd.f32 1.0, %v2714_v43  ;;  %v1732_v45 = vmul.f32 0.5, %v1720_v37  ;;  %v1746_v1 = vmul.f32 %v1734_v5, %v3588_v61 }
 0x8a1   :  { %v1721_v34 = vadd.f32 1.0, %v2716_v52  ;;  %2578 = vmatprep.mubr.msk.bf16.mxu1 %vm1775_vm13, %v1765_v17 }
 0x8a2   :  { %v1735_v55 = vmul.f32 0.5, %v1723_v53  ;;  %2579 = vmatmul.mubr.msk.bf16.vlgmr.msra.gmra.mxu1 %vm1775_vm13, %v1766_v18  ;;  %v2718_v62 = vpop.eup %2717  ;;  %v1744_v40 = vmul.f32 %v1732_v45, %v3595_v50 }
 0x8a3   :  { %v1733_v16 = vmul.f32 0.5, %v1721_v34  ;;  %v1726_v24 = vadd.f32 1.0, %v2718_v62 }
 0x8a4   :  { %v2720_v2 = vpop.eup %2719  ;;  %v1747_v58 = vmul.f32 %v1735_v55, %v3602_v3 }
 0x8a5   :  { %v1745_v60 = vmul.f32 %v1733_v16, %v3606_v39  ;;  %v1724_v32 = vadd.f32 1.0, %v2720_v2  ;;  %v1738_v3 = vmul.f32 0.5, %v1726_v24 }
 0x8a6   :  { %v2722_v28 = vpop.eup %2721  ;;  %v1768_v36 = vpack.c.bf16 %v1747_v58, %v1746_v1 }
 0x8a7   :  { %v1767_v31 = vpack.c.bf16 %v1745_v60, %v1744_v40  ;;  %v1727_v27 = vadd.f32 1.0, %v2722_v28  ;;  %v1736_v48 = vmul.f32 0.5, %v1724_v32  ;;  %v1750_v9 = vmul.f32 %v1738_v3, %v3614_v49 }
 0x8a9   :  { %v2724_v47 = vpop.eup %2723  ;;  %2582 = vmatprep.mubr.msk.bf16.mxu1 %vm1775_vm13, %v1767_v31  ;;  %v1739_v59 = vmul.f32 0.5, %v1727_v27  ;;  %v1748_v61 = vmul.f32 %v1736_v48, %v3622_v22  ;;  %v2329_v22 = vld [vmem:[%s3860_s5 + $0xce] ss:$0 sm:$0xff] }
 0x8aa   :  { %v1725_v57 = vadd.f32 1.0, %v2724_v47  ;;  %2583 = vmatmul.mubr.msk.bf16.gmra.mxu1 %vm1775_vm13, %v1768_v36 }
 0x8ab   :  { %v1751_v39 = vmul.f32 %v1739_v59, %v3629_v23 }
 0x8ac   :  { %v1737_v50 = vmul.f32 0.5, %v1725_v57 }
 0x8ad   :  { %v1770_v15 = vpack.c.bf16 %v1751_v39, %v1750_v9 }
 0x8ae   :  { %v1749_v63 = vmul.f32 %v1737_v50, %v3637_v8 }
 0x8b0   :  { %v1769_v10 = vpack.c.bf16 %v1749_v63, %v1748_v61 }
 0x8b2   :  { %2586 = vmatprep.mubr.msk.bf16.mxu1 %vm1775_vm13, %v1769_v10 }
 0x8b3   :  { %2587 = vmatmul.mubr.msk.bf16.gmra.mxu1 %vm1775_vm13, %v1770_v15 }
 0x8b4   :  { %2610 = vmatprep.mubr.msk.bf16.mxu1 %vm2764_vm14, %v2760_v29 }
 0x962   :  { %v2580_v14 = vpop.f32.mrf.mxu1 }
 0x963   :  { %v1837_v40 = vadd.f32 %v2580_v14, %v2329_v22 }
 0x964   :  { %v1828_v20 = vpop.f32.mrf.mxu1 }
 0x965   :  { %v3681_v28 = vadd.f32 %v1837_v40, %v3483_v12 }
 0x966   :  { %v2581_v4 = vpop.f32.mrf.mxu1 }
 0x967   :  { %v1840_v24 = vadd.f32 %v2581_v4, %v2329_v22 }
 0x968   :  { %v1831_v30 = vpop.f32.mrf.mxu1 }
 0x969   :  { %v1832_v36 = vadd.f32 %v2329_v22, %v1831_v30  ;;  %v3690_v47 = vadd.f32 %v1840_v24, %v3485_v54 }
 0x96a   :  { %v2584_v41 = vpop.f32.mrf.mxu1 }
 0x96b   :  { %v1853_v43 = vadd.f32 %v2584_v41, %v2329_v22  ;;  %v1898_v48 = vsel %vm661_vm2, %v3690_v47, 0.0  ;;  %v3700_v59 = vadd.f32 %v1832_v36, %v3476_v56 }
 0x96c   :  { %v1844_v21 = vpop.f32.mrf.mxu1 }
 0x96d   :  { %v1845_v55 = vadd.f32 %v2329_v22, %v1844_v21  ;;  %v1883_v62 = vadd.f32 %v1853_v43, %v3505_v46  ;;  %v1829_v46 = vadd.f32 %v2329_v22, %v1828_v20  ;;  %v1892_v54 = vsel %vm661_vm2, %v3700_v59, 0.0 }
 0x96e   :  { %v2585_v42 = vpop.f32.mrf.mxu1 }
 0x96f   :  { %v1856_v16 = vadd.f32 %v2585_v42, %v2329_v22  ;;  %v1881_v32 = vadd.f32 %v1845_v55, %v3494_v33  ;;  %v3693_v12 = vadd.f32 %v1829_v46, %v3472_v26 }
 0x970   :  { %v1847_v23 = vpop.f32.mrf.mxu1 }
 0x971   :  { %v1848_v60 = vadd.f32 %v2329_v22, %v1847_v23  ;;  %v1901_v31 = vsel %vm661_vm2, %v1881_v32, 0.0 }
 0x973   :  { %v2588_v8 = vpop.f32.mrf.mxu1  ;;  %v1882_v27 = vadd.f32 %v1848_v60, %v3496_v35  ;;  %v1889_v35 = vsel %vm661_vm2, %v3693_v12, 0.0 }
 0x974   :  { %v1869_v49 = vadd.f32 %v2588_v8, %v2329_v22 }
 0x975   :  { %v1860_v51 = vpop.f32.mrf.mxu1  ;;  %v1904_v33 = vsel %vm661_vm2, %v1882_v27, 0.0 }
 0x976   :  { %v1861_v44 = vadd.f32 %v2329_v22, %v1860_v51  ;;  %v1887_v37 = vadd.f32 %v1869_v49, %v3526_v19 }
 0x977   :  { %v2589_v17 = vpop.f32.mrf.mxu1 }
 0x978   :  { %v1872_v52 = vadd.f32 %v2589_v17, %v2329_v22  ;;  %v1919_v18 = vsel %vm661_vm2, %v1887_v37, 0.0  ;;  %v1885_v53 = vadd.f32 %v1861_v44, %v3516_v25  ;;  %v1907_v25 = vsel %vm661_vm2, %v1883_v62, 0.0 }
 0x979   :  { %1920 = vadd.xlane.f32.xlu1 %v1919_v18  ;;  %v1863_v45 = vpop.f32.mrf.mxu1 }
 0x97a   :  { %v1864_v34 = vadd.f32 %v2329_v22, %v1863_v45  ;;  %v1888_v5 = vadd.f32 %v1872_v52, %v3528_v38  ;;  %v1913_v19 = vsel %vm661_vm2, %v1885_v53, 0.0  ;;  %v1884_v38 = vadd.f32 %v1856_v16, %v3507_v13 }
 0x97b   :  { %v1895_v13 = vsel %vm661_vm2, %v3681_v28, 0.0 }
 0x97c   :  { %v1922_v2 = vsel %vm661_vm2, %v1888_v5, 0.0  ;;  %v1886_v58 = vadd.f32 %v1864_v34, %v3518_v0  ;;  %v1910_v0 = vsel %vm661_vm2, %v1884_v38, 0.0 }
 0x97d   :  { %1923 = vadd.xlane.f32.xlu0 %v1922_v2  ;;  %1914 = vadd.xlane.f32.xlu1 %v1913_v19 }
 0x97e   :  { %v1916_v1 = vsel %vm661_vm2, %v1886_v58, 0.0 }
 0x981   :  { %1917 = vadd.xlane.f32.xlu0 %v1916_v1  ;;  %1908 = vadd.xlane.f32.xlu1 %v1907_v25 }
 0x985   :  { %1911 = vadd.xlane.f32.xlu0 %v1910_v0  ;;  %1902 = vadd.xlane.f32.xlu1 %v1901_v31 }
 0x989   :  { %1905 = vadd.xlane.f32.xlu0 %v1904_v33  ;;  %1896 = vadd.xlane.f32.xlu1 %v1895_v13 }
 0x98d   :  { %1899 = vadd.xlane.f32.xlu0 %v1898_v48  ;;  %1890 = vadd.xlane.f32.xlu1 %v1889_v35 }
 0x991   :  { %1893 = vadd.xlane.f32.xlu0 %v1892_v54 }
 0xa02   :  { %v1921_v57 = vpop.xlane.xlu1 %1920 }
 0xa03   :  { %v1935_v26 = vmul.f32 0.03125, %v1921_v57 }
 0xa05   :  { %v3704_v3 = vsub.f32 %v1887_v37, %v1935_v26  ;;  %v2139_v26 = vld [vmem:[%s3860_s5 + $0x58] sm:$0xff] }
 0xa06   :  { %v1924_v50 = vpop.xlane.xlu0 %1923  ;;  %v1915_v39 = vpop.xlane.xlu1 %1914 }
 0xa07   :  { %v1936_v61 = vmul.f32 0.03125, %v1924_v50  ;;  %v1933_v63 = vmul.f32 0.03125, %v1915_v39  ;;  %v1959_v9 = vmul.f32 %v3704_v3, %v3704_v3  ;;  %v2136_v50 = vld [vmem:[%s3860_s5 + $0x40] sm:$0xff] }
 0xa09   :  { %v3708_v10 = vsub.f32 %v1888_v5, %v1936_v61  ;;  %v3710_v56 = vsub.f32 %v1885_v53, %v1933_v63  ;;  %v1991_v15 = vsel %vm661_vm2, %v1959_v9, 0.0  ;;  %v2137_v61 = vld [vmem:[%s3860_s5 + $0x48] sm:$0xff] }
 0xa0a   :  { %v1918_v14 = vpop.xlane.xlu0 %1917  ;;  %1992 = vadd.xlane.f32.xlu1 %v1991_v15  ;;  %v1909_v20 = vpop.xlane.xlu1 %1908  ;;  %v2140_v63 = vpack.c.bf16 %v2137_v61, %v2136_v50 }
 0xa0b   :  { %v1934_v4 = vmul.f32 0.03125, %v1918_v14  ;;  %v1931_v30 = vmul.f32 0.03125, %v1909_v20  ;;  %v1960_v41 = vmul.f32 %v3708_v10, %v3708_v10  ;;  %v1957_v21 = vmul.f32 %v3710_v56, %v3710_v56 }
 0xa0d   :  { %v3717_v42 = vsub.f32 %v1886_v58, %v1934_v4  ;;  %v3719_v23 = vsub.f32 %v1883_v62, %v1931_v30  ;;  %v1994_v22 = vsel %vm661_vm2, %v1960_v41, 0.0  ;;  %v1985_v8 = vsel %vm661_vm2, %v1957_v21, 0.0 }
 0xa0e   :  { %1995 = vadd.xlane.f32.xlu0 %v1994_v22  ;;  %v1912_v49 = vpop.xlane.xlu0 %1911  ;;  %1986 = vadd.xlane.f32.xlu1 %v1985_v8  ;;  %v1903_v51 = vpop.xlane.xlu1 %1902 }
 0xa0f   :  { %v1932_v44 = vmul.f32 0.03125, %v1912_v49  ;;  %v1929_v37 = vmul.f32 0.03125, %v1903_v51  ;;  %v1958_v43 = vmul.f32 %v3717_v42, %v3717_v42  ;;  %v1955_v17 = vmul.f32 %v3719_v23, %v3719_v23 }
 0xa11   :  { %v3727_v52 = vsub.f32 %v1884_v38, %v1932_v44  ;;  %v3729_v18 = vsub.f32 %v1881_v32, %v1929_v37  ;;  %v1988_v53 = vsel %vm661_vm2, %v1958_v43, 0.0  ;;  %v1979_v45 = vsel %vm661_vm2, %v1955_v17, 0.0 }
 0xa12   :  { %1989 = vadd.xlane.f32.xlu0 %v1988_v53  ;;  %v1906_v34 = vpop.xlane.xlu0 %1905  ;;  %1980 = vadd.xlane.f32.xlu1 %v1979_v45  ;;  %v1897_v5 = vpop.xlane.xlu1 %1896 }
 0xa13   :  { %v1930_v55 = vmul.f32 0.03125, %v1906_v34  ;;  %v1927_v62 = vmul.f32 0.03125, %v1897_v5  ;;  %v1956_v16 = vmul.f32 %v3727_v52, %v3727_v52  ;;  %v1953_v2 = vmul.f32 %v3729_v18, %v3729_v18 }
 0xa15   :  { %v3737_v19 = vsub.f32 %v1882_v27, %v1930_v55  ;;  %v3740_v58 = vsub.f32 %v3681_v28, %v1927_v62  ;;  %v1982_v40 = vsel %vm661_vm2, %v1956_v16, 0.0  ;;  %v1973_v25 = vsel %vm661_vm2, %v1953_v2, 0.0 }
 0xa16   :  { %1983 = vadd.xlane.f32.xlu0 %v1982_v40  ;;  %v1900_v60 = vpop.xlane.xlu0 %1899  ;;  %1974 = vadd.xlane.f32.xlu1 %v1973_v25  ;;  %v1891_v1 = vpop.xlane.xlu1 %1890 }
 0xa17   :  { %v1928_v38 = vmul.f32 0.03125, %v1900_v60  ;;  %v1925_v32 = vmul.f32 0.03125, %v1891_v1  ;;  %v1954_v46 = vmul.f32 %v3737_v19, %v3737_v19  ;;  %v1951_v24 = vmul.f32 %v3740_v58, %v3740_v58 }
 0xa19   :  { %v3749_v0 = vsub.f32 %v3690_v47, %v1928_v38  ;;  %v3752_v28 = vsub.f32 %v3693_v12, %v1925_v32  ;;  %v1976_v31 = vsel %vm661_vm2, %v1954_v46, 0.0  ;;  %v1967_v27 = vsel %vm661_vm2, %v1951_v24, 0.0  ;;  %v3786_v38 = vld [vmem:[%s3860_s5 + $0xd1] ss:$0 sm:$0xff] }
 0xa1a   :  { %1977 = vadd.xlane.f32.xlu0 %v1976_v31  ;;  %v1894_v13 = vpop.xlane.xlu0 %1893  ;;  %1968 = vadd.xlane.f32.xlu1 %v1967_v27 }
 0xa1b   :  { %v1926_v36 = vmul.f32 0.03125, %v1894_v13  ;;  %v1952_v33 = vmul.f32 %v3749_v0, %v3749_v0  ;;  %v1949_v48 = vmul.f32 %v3752_v28, %v3752_v28 }
 0xa1d   :  { %v3761_v47 = vsub.f32 %v3700_v59, %v1926_v36  ;;  %v1970_v12 = vsel %vm661_vm2, %v1952_v33, 0.0  ;;  %v1961_v35 = vsel %vm661_vm2, %v1949_v48, 0.0  ;;  %v2138_v59 = vld [vmem:[%s3860_s5 + $0x50] sm:$0xff] }
 0xa1e   :  { %1971 = vadd.xlane.f32.xlu0 %v1970_v12  ;;  %1962 = vadd.xlane.f32.xlu1 %v1961_v35  ;;  %v2141_v39 = vpack.c.bf16 %v2139_v26, %v2138_v59  ;;  %v3793_v35 = vld [vmem:[%s3860_s5 + $0xd2] ss:$0 sm:$0xff] }
 0xa1f   :  { %v1950_v54 = vmul.f32 %v3761_v47, %v3761_v47 }
 0xa20   :  { %2607 = vmatpush3.bf16.msra.mxu1 %v2141_v39 }
 0xa21   :  { %v1964_v57 = vsel %vm661_vm2, %v1950_v54, 0.0  ;;  %2608 = vmatprep.subr.bf16.mxu1 %v2760_v29 }
 0xa22   :  { %1965 = vadd.xlane.f32.xlu0 %v1964_v57 }
 0xa24   :  { %2609 = vmatpush3.bf16.msra.mxu1 %v2140_v63 }
 0xa93   :  { %v1993_v9 = vpop.xlane.xlu1 %1992 }
 0xa94   :  { %v2007_v15 = vmul.f32 0.03125, %v1993_v9 }
 0xa96   :  { %v2019_v14 = vadd.f32 1e-12, %v2007_v15 }
 0xa97   :  { %v1996_v20 = vpop.xlane.xlu0 %1995  ;;  %v1987_v4 = vpop.xlane.xlu1 %1986 }
 0xa98   :  { %2725 = vrsqrt.f32 %v2019_v14  ;;  %v2008_v30 = vmul.f32 0.03125, %v1996_v20  ;;  %v2005_v41 = vmul.f32 0.03125, %v1987_v4 }
 0xa9a   :  { %v2020_v21 = vadd.f32 1e-12, %v2008_v30  ;;  %v2017_v22 = vadd.f32 1e-12, %v2005_v41 }
 0xa9b   :  { %v1990_v8 = vpop.xlane.xlu0 %1989  ;;  %v1981_v49 = vpop.xlane.xlu1 %1980 }
 0xa9c   :  { %2727 = vrsqrt.f32 %v2020_v21  ;;  %v2006_v51 = vmul.f32 0.03125, %v1990_v8  ;;  %v2003_v44 = vmul.f32 0.03125, %v1981_v49 }
 0xa9d   :  { %2729 = vrsqrt.f32 %v2017_v22 }
 0xa9e   :  { %v2018_v37 = vadd.f32 1e-12, %v2006_v51  ;;  %v2015_v43 = vadd.f32 1e-12, %v2003_v44 }
 0xa9f   :  { %v1984_v17 = vpop.xlane.xlu0 %1983  ;;  %v1975_v53 = vpop.xlane.xlu1 %1974 }
 0xaa0   :  { %2731 = vrsqrt.f32 %v2018_v37  ;;  %v2004_v45 = vmul.f32 0.03125, %v1984_v17  ;;  %v2001_v34 = vmul.f32 0.03125, %v1975_v53 }
 0xaa1   :  { %2733 = vrsqrt.f32 %v2015_v43 }
 0xaa2   :  { %v2016_v5 = vadd.f32 1e-12, %v2004_v45  ;;  %v2013_v55 = vadd.f32 1e-12, %v2001_v34 }
 0xaa3   :  { %v1978_v62 = vpop.xlane.xlu0 %1977  ;;  %v1969_v16 = vpop.xlane.xlu1 %1968 }
 0xaa4   :  { %2735 = vrsqrt.f32 %v2016_v5  ;;  %v2002_v2 = vmul.f32 0.03125, %v1978_v62  ;;  %v1999_v40 = vmul.f32 0.03125, %v1969_v16 }
 0xaa5   :  { %v2726_v25 = vpop.eup %2725  ;;  %2737 = vrsqrt.f32 %v2013_v55 }
 0xaa6   :  { %v2014_v60 = vadd.f32 1e-12, %v2002_v2  ;;  %v2011_v1 = vadd.f32 1e-12, %v1999_v40  ;;  %v2043_v32 = vmul.f32 %v2726_v25, %v3704_v3  ;;  %v2077_v2 = vmul.u32 8, %v2814_v6 }
 0xaa7   :  { %v1972_v46 = vpop.xlane.xlu0 %1971  ;;  %v1963_v24 = vpop.xlane.xlu1 %1962  ;;  %v2078_v40 = vmul.u32 8, %v2826_v11 }
 0xaa8   :  { %2739 = vrsqrt.f32 %v2014_v60  ;;  %v2000_v31 = vmul.f32 0.03125, %v1972_v46  ;;  %v1997_v27 = vmul.f32 0.03125, %v1963_v24  ;;  %v2059_v36 = vmul.f32 %v3786_v38, %v2043_v32 }
 0xaa9   :  { %v2728_v13 = vpop.eup %2727  ;;  %2741 = vrsqrt.f32 %v2011_v1  ;;  %vm2079_vm15 = vcmp.eq.s32.totalorder %v2816_v7, %v2077_v2  ;;  %vm2080_vm0 = vcmp.eq.s32.totalorder %v2816_v7, %v2078_v40 }
 0xaaa   :  { %v2730_v33 = vpop.eup %2729  ;;  %v2012_v48 = vadd.f32 1e-12, %v2000_v31  ;;  %v2009_v12 = vadd.f32 1e-12, %v1997_v27  ;;  %v2044_v54 = vmul.f32 %v2728_v13, %v3708_v10  ;;  %v2075_v39 = vadd.f32 %v3793_v35, %v2059_v36 }
 0xaab   :  { %v1966_v3 = vpop.xlane.xlu0 %1965  ;;  %v2041_v57 = vmul.f32 %v2730_v33, %v3710_v56  ;;  %v2339_v31 = vsel %vm2080_vm0, 1.0, %v2760_v29 }
 0xaac   :  { %2743 = vrsqrt.f32 %v2012_v48  ;;  %v1998_v59 = vmul.f32 0.03125, %v1966_v3  ;;  %v2060_v26 = vmul.f32 %v3786_v38, %v2044_v54  ;;  %v2341_v3 = vld [vmem:[%s3860_s5 + $0xcc] ss:$0 sm:$0xff] }
 0xaad   :  { %v2732_v50 = vpop.eup %2731  ;;  %2745 = vrsqrt.f32 %v2009_v12  ;;  %v2057_v14 = vmul.f32 %v3786_v38, %v2041_v57 }
 0xaae   :  { %v2734_v61 = vpop.eup %2733  ;;  %v2010_v63 = vadd.f32 1e-12, %v1998_v59  ;;  %v2076_v9 = vadd.f32 %v3793_v35, %v2060_v26  ;;  %v2042_v15 = vmul.f32 %v2732_v50, %v3717_v42 }
 0xaaf   :  { %v2039_v10 = vmul.f32 %v2734_v61, %v3719_v23  ;;  %v2073_v41 = vadd.f32 %v3793_v35, %v2057_v14 }
 0xab0   :  { %2747 = vrsqrt.f32 %v2010_v63  ;;  %v2091_v56 = vpack.c.bf16 %v2076_v9, %v2075_v39  ;;  %v2058_v20 = vmul.f32 %v3786_v38, %v2042_v15 }
 0xab1   :  { %v2736_v4 = vpop.eup %2735  ;;  %v2055_v8 = vmul.f32 %v3786_v38, %v2039_v10 }
 0xab2   :  { %v2738_v30 = vpop.eup %2737  ;;  %2591 = vmatpush3.bf16.msra.mxu0 %v2091_v56  ;;  %v2074_v21 = vadd.f32 %v3793_v35, %v2058_v20  ;;  %v2040_v22 = vmul.f32 %v2736_v4, %v3727_v52  ;;  %v2228_v20 = vadd.s32 1, %v2816_v7 }
 0xab3   :  { %2592 = vmatprep.subr.bf16.mxu0 %v2760_v29  ;;  %v2037_v42 = vmul.f32 %v2738_v30, %v3729_v18  ;;  %v2071_v37 = vadd.f32 %v3793_v35, %v2055_v8 }
 0xab4   :  { %v2090_v23 = vpack.c.bf16 %v2074_v21, %v2073_v41  ;;  %v2056_v49 = vmul.f32 %v3786_v38, %v2040_v22 }
 0xab5   :  { %v2740_v51 = vpop.eup %2739  ;;  %v2053_v52 = vmul.f32 %v3786_v38, %v2037_v42 }
 0xab6   :  { %v2742_v44 = vpop.eup %2741  ;;  %2593 = vmatpush3.bf16.msra.mxu0 %v2090_v23  ;;  %v2072_v43 = vadd.f32 %v3793_v35, %v2056_v49  ;;  %v2038_v17 = vmul.f32 %v2740_v51, %v3737_v19 }
 0xab7   :  { %2594 = vmatprep.subr.bf16.mxu0 %v2760_v29  ;;  %v2035_v53 = vmul.f32 %v2742_v44, %v3740_v58  ;;  %v2069_v55 = vadd.f32 %v3793_v35, %v2053_v52 }
 0xab8   :  { %v2089_v45 = vpack.c.bf16 %v2072_v43, %v2071_v37  ;;  %v2054_v18 = vmul.f32 %v3786_v38, %v2038_v17 }
 0xab9   :  { %v2744_v34 = vpop.eup %2743  ;;  %v2051_v19 = vmul.f32 %v3786_v38, %v2035_v53 }
 0xaba   :  { %v2746_v5 = vpop.eup %2745  ;;  %2595 = vmatpush3.bf16.msra.mxu0 %v2089_v45  ;;  %v2070_v62 = vadd.f32 %v3793_v35, %v2054_v18  ;;  %v2036_v16 = vmul.f32 %v2744_v34, %v3749_v0 }
 0xabb   :  { %2596 = vmatprep.subr.bf16.mxu0 %v2760_v29  ;;  %v2033_v58 = vmul.f32 %v2746_v5, %v3752_v28  ;;  %v2067_v32 = vadd.f32 %v3793_v35, %v2051_v19  ;;  %v2338_v28 = vsel %vm2079_vm15, 1.0, %v2760_v29 }
 0xabc   :  { %v2088_v25 = vpack.c.bf16 %v2070_v62, %v2069_v55  ;;  %v2052_v60 = vmul.f32 %v3786_v38, %v2036_v16  ;;  %v2085_v36 = vpack.c.bf16 %v2339_v31, %v2338_v28 }
 0xabd   :  { %v2748_v1 = vpop.eup %2747  ;;  %v2049_v24 = vmul.f32 %v3786_v38, %v2033_v58 }
 0xabe   :  { %2597 = vmatpush3.bf16.msra.mxu0 %v2088_v25  ;;  %v2068_v46 = vadd.f32 %v3793_v35, %v2052_v60  ;;  %v2034_v0 = vmul.f32 %v2748_v1, %v3761_v47 }
 0xabf   :  { %2598 = vmatprep.subr.bf16.mxu0 %v2760_v29  ;;  %v2065_v27 = vadd.f32 %v3793_v35, %v2049_v24 }
 0xac0   :  { %v2087_v6 = vpack.c.bf16 %v2068_v46, %v2067_v32  ;;  %v2050_v11 = vmul.f32 %v3786_v38, %v2034_v0 }
 0xac2   :  { %2599 = vmatpush3.bf16.msra.mxu0 %v2087_v6  ;;  %v2066_v47 = vadd.f32 %v3793_v35, %v2050_v11 }
 0xac3   :  { %2600 = vmatprep.subr.bf16.mxu0 %v2760_v29 }
 0xac4   :  { %v2086_v13 = vpack.c.bf16 %v2066_v47, %v2065_v27 }
 0xac6   :  { %2601 = vmatpush3.bf16.msra.mxu0 %v2086_v13 }
 0xac9   :  { %2603 = vmatmul.mubr.msk.bf16.vlgmr.msra.gmra.mxu0 %vm953_vm12, %v2085_v36 }
 0xb89   :  { %v2129_v33 = vpop.f32.mrf.mxu0 }
 0xb8b   :  { %v2604_v48 = vpop.f32.mrf.mxu0 }
 0xb8d   :  { %v2132_v12 = vpop.f32.mrf.mxu0 }
 0xb8e   :  { %v2143_v38 = vpack.c.bf16 %v2132_v12, %v2129_v33 }
 0xb8f   :  { %v2605_v54 = vpop.f32.mrf.mxu0 }
 0xb90   :  { %2611 = vmatmul.mubr.msk.bf16.vlgmr.msra.gmra.mxu1 %vm661_vm2, %v2143_v38 }
 0xc50   :  { %v2185_v57 = vpop.f32.mrf.mxu1 }
 0xc51   :  { %v2186_v35 = vadd.f32 %v2341_v3, %v2185_v57 }
 0xc52   :  { %v2612_v59 = vpop.f32.mrf.mxu1 }
 0xc53   :  { %2749 = vtanh.f32 %v2186_v35 }
 0xc54   :  { %v2188_v29 = vpop.f32.mrf.mxu1 }
 0xc55   :  { %v2189_v26 = vadd.f32 %v2341_v3, %v2188_v29 }
 0xc56   :  { %v2613_v50 = vpop.f32.mrf.mxu1 }
 0xc57   :  { %2751 = vtanh.f32 %v2189_v26 }
 0xc60   :  { %v2750_v39 = vpop.eup %2749 }
 0xc61   :  { %v2195_v61 = vrot.slane %v2750_v39, 4 }
 0xc63   :  { %v2197_v63 = vmul.f32 %v2750_v39, %v2195_v61 }
 0xc64   :  { %v2752_v9 = vpop.eup %2751 }
 0xc65   :  { %v2199_v15 = vsel %vm2198_vm1, %v2197_v63, 0.0  ;;  %v2202_v14 = vmul.f32 %v2752_v9, %v2750_v39 }
 0xc66   :  { %2200 = vadd.xlane.f32.xlu1 %v2199_v15 }
 0xc67   :  { %v2203_v10 = vsel %vm2198_vm1, %v2202_v14, 0.0 }
 0xc68   :  { %2204 = vadd.xlane.f32.xlu0 %v2203_v10 }
 0xcef   :  { %v2201_v56 = vpop.xlane.xlu1 %2200 }
 0xcf1   :  { %v2205_v4 = vpop.xlane.xlu0 %2204 }
 0xcf2   :  { %v2206_v30 = vmax.f32 %v2201_v56, %v2205_v4 }
 0xcf4   :  { %v2207_v41 = vsub.f32 %v2201_v56, %v2206_v30  ;;  %v2211_v21 = vsub.f32 %v2205_v4, %v2206_v30  ;;  %vm2229_vm2 = vcmp.ge.f32.partialorder %v2201_v56, %v2206_v30  ;;  %vm2231_vm4 = vcmp.ge.f32.partialorder %v2205_v4, %v2206_v30 }
 0xcf5   :  { %v2230_v22 = vsel %vm2229_vm2, %v2816_v7, 1073741824  ;;  %v2232_v8 = vsel %vm2231_vm4, %v2228_v20, 1073741824 }
 0xcf6   :  { %v2208_v42 = vmul.f32 1.442695, %v2207_v41  ;;  %v2212_v23 = vmul.f32 1.442695, %v2211_v21  ;;  %vm2233_vm6 = vcmp.lt.s32.totalorder %v2230_v22, %v2232_v8 }
 0xcf7   :  { %v2234_v49 = vsel %vm2233_vm6, %v2230_v22, %v2232_v8 }
 0xcf8   :  { %2753 = vpow2.f32 %v2208_v42  ;;  %v2236_v51 = vcvt.s32.f32 %v2234_v49 }
 0xcf9   :  { %2755 = vpow2.f32 %v2212_v23 }
 0xcfa   :  { %2239 = vperm.xlu1 %2628, %v2236_v51  }
 0xd05   :  { %v2754_v44 = vpop.eup %2753 }
 0xd06   :  { %v2756_v37 = vpop.eup %2755 }
 0xd07   :  { %v2215_v43 = vadd.f32 %v2756_v37, %v2754_v44 }
 0xd09   :  { %2757 = vlog2.f32 %v2215_v43 }
 0xd16   :  { %v2758_v17 = vpop.eup %2757 }
 0xd17   :  { %v2217_v52 = vmul.f32 0.6931472, %v2758_v17 }
 0xd19   :  { %v2218_v53 = vadd.f32 %v2217_v52, %v2206_v30 }
 0xd1b   :  { %v2219_v45 = vsub.f32 %v2218_v53, %v2201_v56 }
 0xd1d   :  { %v2220_v18 = vsel %vm360_vm3, %v2219_v45, 0.0 }
 0xd1e   :  { %v2221_v7 = vrot.slane %v2220_v18, 4 }
 0xd20   :  { %v2222_v34 = vadd.f32 %v2221_v7, %v2220_v18 }
 0xd22   :  { %v2223_v5 = vrot.slane %v2222_v34, 2 }
 0xd24   :  { %v2224_v55 = vadd.f32 %v2223_v5, %v2222_v34 }
 0xd26   :  { %v2225_v62 = vrot.slane %v2224_v55, 1 }
 0xd28   :  { %v2226_v16 = vadd.f32 %v2225_v62, %v2224_v55 }
 0xd2a   :  { %v2227_v19 = vmul.f32 0.25, %v2226_v16 }
 0xd2c   :  { %2235 = vst [vmem:[%s3863_s6] sm:$0x1] %v2227_v19  ;;  %v2243_v2 = vmul.f32 0.0, %v2227_v19 }
 0xd2e   :  { %2244 = vst [vmem:[%s3863_s6 + $0x5] sm:$0x7] %v2243_v2 }
 0xd75   :  { %v2240_v40 = vpop.permute.xlu1 %2239 }
 0xd76   :  { %2242 = vst [vmem:[%s3863_s6 + $0x1] sm:$0xf] %v2240_v40 }

</bundles_post_ra>
